<compile_context>
chip_gen: v7x
topology: tpu7x:2x2x1
jax: 0.10.0
libtpu: 0.0.40
codegen_flags: <defaults>
</compile_context>

<pallas_src>
import functools

import jax
import jax.numpy as jnp
from jax.experimental import pallas as pl
from jax.experimental.pallas import tpu as pltpu

IN_DIM = 140
HID_DIM = 20
LAT_DIM = 5
HEADS_DIM = 2 * LAT_DIM  # fused mu | log_var


def _round_up(n, m):
    return ((n + m - 1) // m) * m


def _vae_kernel(x_ref,
                w_enc_ref, b_enc_ref,
                w_heads_ref, b_heads_ref,
                eps_ref,
                w_d1_ref, b_d1_ref,
                w_d2_ref, b_d2_ref,
                out_ref, mulv_ref):
    x = x_ref[...]

    # encoder: Linear(140, 20) + Sigmoid
    h = jnp.dot(x, w_enc_ref[...], preferred_element_type=jnp.float32) + b_enc_ref[...]
    h = jax.nn.sigmoid(h)

    # fused mu / log_var heads: one Linear(20, 10), split with static slices
    heads = jnp.dot(h, w_heads_ref[...], preferred_element_type=jnp.float32) + b_heads_ref[...]
    mu = heads[:, :LAT_DIM]
    lv = heads[:, LAT_DIM:]

    # reparameterization: z = eps * exp(0.5 * log_var) + mu
    z = eps_ref[...] * jnp.exp(0.5 * lv) + mu

    # decoder: Linear(5, 20) + Sigmoid + Linear(20, 140)
    d = jnp.dot(z, w_d1_ref[...], preferred_element_type=jnp.float32) + b_d1_ref[...]
    d = jax.nn.sigmoid(d)
    out_ref[...] = jnp.dot(d, w_d2_ref[...], preferred_element_type=jnp.float32) + b_d2_ref[...]

    # lane-denser fused (mu | log_var) output; split in the wrapper.
    mulv_ref[...] = heads


@functools.partial(jax.jit, static_argnames=("tile_rows",))
def vmd_vae_dnn_forward(x, params, eps, *, tile_rows=1024):
    """Runs the full VMD_VAE_DNN forward as one batch-tiled Pallas call.

    Args:
      x:         (B, 140) float32
      params:    dict of weights/biases (see init_params)
      eps:       (B, 5) float32 standard-normal noise (torch.randn_like equivalent)
      tile_rows: rows per grid step (clamped to the padded batch, multiple of 8).
                 Sized conservatively so double-buffered tiles fit every
                 generation's scoped VMEM (v5e 16 MiB default ... v7x 64 MiB total).

    Returns:
      (out, mu, log_var): (B, 140), (B, 5), (B, 5)
    """
    B = x.shape[0]
    tb = min(int(tile_rows), _round_up(B, 8))
    tb = _round_up(tb, 8)
    Bp = _round_up(B, tb)
    if Bp != B:
        x = jnp.pad(x, ((0, Bp - B), (0, 0)))
        eps = jnp.pad(eps, ((0, Bp - B), (0, 0)))
    num_tiles = Bp // tb

    # Fuse the mu / log_var heads into one (20, 10) linear.
    w_heads = jnp.concatenate([params["w_mu"], params["w_lv"]], axis=1)
    b_heads = jnp.concatenate([params["b_mu"], params["b_lv"]], axis=1)

    def _tiled(shape):
        return pl.BlockSpec(shape, lambda i: (i, 0))

    def _resident(shape):
        # Constant block index -> weights are DMA'd once and stay VMEM-resident.
        return pl.BlockSpec(shape, lambda i: (0, 0))

    in_specs = [
        _tiled((tb, IN_DIM)),                    # x
        _resident((IN_DIM, HID_DIM)),            # w_enc
        _resident((1, HID_DIM)),                 # b_enc
        _resident((HID_DIM, HEADS_DIM)),         # w_heads (mu | log_var)
        _resident((1, HEADS_DIM)),               # b_heads
        _tiled((tb, LAT_DIM)),                   # eps
        _resident((LAT_DIM, HID_DIM)),           # w_d1
        _resident((1, HID_DIM)),                 # b_d1
        _resident((HID_DIM, IN_DIM)),            # w_d2
        _resident((1, IN_DIM)),                  # b_d2
    ]
    out_specs = (
        _tiled((tb, IN_DIM)),                    # reconstruction
        _tiled((tb, HEADS_DIM)),                 # fused mu | log_var
    )
    out_shapes = (
        jax.ShapeDtypeStruct((Bp, IN_DIM), jnp.float32),
        jax.ShapeDtypeStruct((Bp, HEADS_DIM), jnp.float32),
    )

    weight_bytes = 4 * (IN_DIM * HID_DIM + HID_DIM + HID_DIM * HEADS_DIM + HEADS_DIM
                        + LAT_DIM * HID_DIM + HID_DIM + HID_DIM * IN_DIM + IN_DIM)
    cost = pl.CostEstimate(
        flops=2 * Bp * (IN_DIM * HID_DIM + HID_DIM * HEADS_DIM
                        + LAT_DIM * HID_DIM + HID_DIM * IN_DIM),
        transcendentals=Bp * (HID_DIM + LAT_DIM + HID_DIM),
        bytes_accessed=4 * Bp * (IN_DIM + LAT_DIM + IN_DIM + HEADS_DIM) + weight_bytes,
    )

    out, mulv = pl.pallas_call(
        _vae_kernel,
        out_shape=out_shapes,
        grid=(num_tiles,),
        in_specs=in_specs,
        out_specs=out_specs,
        compiler_params=pltpu.CompilerParams(
            dimension_semantics=("parallel",),   # shards batch tiles across TCs on v7x
            vmem_limit_bytes=64 << 20,
        ),
        cost_estimate=cost,
    )(x,
      params["w_enc"], params["b_enc"],
      w_heads, b_heads,
      eps,
      params["w_d1"], params["b_d1"],
      params["w_d2"], params["b_d2"])

    out = out[:B]
    mu = mulv[:B, :LAT_DIM]
    log_var = mulv[:B, LAT_DIM:]
    return out, mu, log_var


def init_params(key):
    """Deterministic PyTorch-style uniform(-1/sqrt(fan_in), 1/sqrt(fan_in)) init.

    Weights are stored as (in_features, out_features); biases as (1, out_features)
    so they stay 2-D (sublane x lane) inside the kernel.
    """
    def linear(key, fan_in, fan_out):
        kw, kb = jax.random.split(key)
        bound = 1.0 / jnp.sqrt(float(fan_in))
        w = jax.random.uniform(kw, (fan_in, fan_out), jnp.float32, -bound, bound)
        b = jax.random.uniform(kb, (1, fan_out), jnp.float32, -bound, bound)
        return w, b

    keys = jax.random.split(key, 5)
    w_enc, b_enc = linear(keys[0], IN_DIM, HID_DIM)   # encoder Linear(140, 20)
    w_mu, b_mu = linear(keys[1], HID_DIM, LAT_DIM)    # mu Linear(20, 5)
    w_lv, b_lv = linear(keys[2], HID_DIM, LAT_DIM)    # log_var Linear(20, 5)
    w_d1, b_d1 = linear(keys[3], LAT_DIM, HID_DIM)    # decoder Linear(5, 20)
    w_d2, b_d2 = linear(keys[4], HID_DIM, IN_DIM)     # decoder Linear(20, 140)
    return dict(w_enc=w_enc, b_enc=b_enc, w_mu=w_mu, b_mu=b_mu,
                w_lv=w_lv, b_lv=b_lv, w_d1=w_d1, b_d1=b_d1,
                w_d2=w_d2, b_d2=b_d2)


def reference_forward(x, params, eps):
    """Pure-JAX reference of the PyTorch forward for correctness checking."""
    h = jax.nn.sigmoid(x @ params["w_enc"] + params["b_enc"])
    mu = h @ params["w_mu"] + params["b_mu"]
    lv = h @ params["w_lv"] + params["b_lv"]
    z = eps * jnp.exp(0.5 * lv) + mu
    d = jax.nn.sigmoid(z @ params["w_d1"] + params["b_d1"])
    out = d @ params["w_d2"] + params["b_d2"]
    return out, mu, lv


if __name__ == "__main__":
    key = jax.random.PRNGKey(0)
    k_params, k_x, k_eps = jax.random.split(key, 3)

    # Small but grid-exercising batch: 300 rows, 128-row tiles -> padded to 384,
    # grid of 3 steps plus a padding slice on the way out.
    B = 300
    params = init_params(k_params)
    x = jax.random.normal(k_x, (B, IN_DIM), jnp.float32)
    # epsilon ~ N(0, I): the torch.randn_like in sampling(); drawn outside the
    # kernel for deterministic reproducibility.
    eps = jax.random.normal(k_eps, (B, LAT_DIM), jnp.float32)

    out, mu, log_var = vmd_vae_dnn_forward(x, params, eps, tile_rows=128)
    jax.block_until_ready((out, mu, log_var))

    # sanity check against the pure-JAX reference
    ref_out, ref_mu, ref_lv = reference_forward(x, params, eps)
    assert out.shape == (B, IN_DIM) and mu.shape == (B, LAT_DIM) and log_var.shape == (B, LAT_DIM)
    assert jnp.allclose(out, ref_out, atol=1e-5)
    assert jnp.allclose(mu, ref_mu, atol=1e-5)
    assert jnp.allclose(log_var, ref_lv, atol=1e-5)

    # also exercise the single-tile (tiny batch) path
    out2, mu2, lv2 = vmd_vae_dnn_forward(x[:8], params, eps[:8], tile_rows=1024)
    jax.block_until_ready((out2, mu2, lv2))
    assert jnp.allclose(out2, ref_out[:8], atol=1e-5)
    assert jnp.allclose(mu2, ref_mu[:8], atol=1e-5)
    assert jnp.allclose(lv2, ref_lv[:8], atol=1e-5)

    print("KERNEL_OK")
</pallas_src>

<mosaic_0001>
module attributes {stable_mosaic.version = 11 : i64} {
  func.func @_vae_kernel(%arg0: i32, %arg1: memref<128x140xf32, #tpu.memory_space<vmem>>, %arg2: memref<140x20xf32, #tpu.memory_space<vmem>>, %arg3: memref<1x20xf32, #tpu.memory_space<vmem>>, %arg4: memref<20x10xf32, #tpu.memory_space<vmem>>, %arg5: memref<1x10xf32, #tpu.memory_space<vmem>>, %arg6: memref<128x5xf32, #tpu.memory_space<vmem>>, %arg7: memref<5x20xf32, #tpu.memory_space<vmem>>, %arg8: memref<1x20xf32, #tpu.memory_space<vmem>>, %arg9: memref<20x140xf32, #tpu.memory_space<vmem>>, %arg10: memref<1x140xf32, #tpu.memory_space<vmem>>, %arg11: memref<128x140xf32, #tpu.memory_space<vmem>>, %arg12: memref<128x10xf32, #tpu.memory_space<vmem>>) attributes {dimension_semantics = [#tpu.dimension_semantics<parallel>], iteration_bounds = array<i64: 3>, scalar_prefetch = 0 : i64, scratch_operands = 0 : i64, tpu.core_type = #tpu.core_type<tc>, window_params = [{transform_indices = @transform_0, window_bounds = array<i64: 128, 140>}, {pipeline_mode = #tpu.pipeline_mode<synchronous>, transform_indices = @transform_1, window_bounds = array<i64: 140, 20>}, {pipeline_mode = #tpu.pipeline_mode<synchronous>, transform_indices = @transform_2, window_bounds = array<i64: 1, 20>}, {pipeline_mode = #tpu.pipeline_mode<synchronous>, transform_indices = @transform_3, window_bounds = array<i64: 20, 10>}, {pipeline_mode = #tpu.pipeline_mode<synchronous>, transform_indices = @transform_4, window_bounds = array<i64: 1, 10>}, {transform_indices = @transform_5, window_bounds = array<i64: 128, 5>}, {pipeline_mode = #tpu.pipeline_mode<synchronous>, transform_indices = @transform_6, window_bounds = array<i64: 5, 20>}, {pipeline_mode = #tpu.pipeline_mode<synchronous>, transform_indices = @transform_7, window_bounds = array<i64: 1, 20>}, {pipeline_mode = #tpu.pipeline_mode<synchronous>, transform_indices = @transform_8, window_bounds = array<i64: 20, 140>}, {pipeline_mode = #tpu.pipeline_mode<synchronous>, transform_indices = @transform_9, window_bounds = array<i64: 1, 140>}, {transform_indices = @transform_10, window_bounds = array<i64: 128, 140>}, {transform_indices = @transform_11, window_bounds = array<i64: 128, 10>}]} {
    %c0 = arith.constant 0 : index
    %c0_0 = arith.constant 0 : index
    %0 = vector.load %arg1[%c0, %c0_0] : memref<128x140xf32, #tpu.memory_space<vmem>>, vector<128x140xf32>
    %c0_1 = arith.constant 0 : index
    %c0_2 = arith.constant 0 : index
    %1 = vector.load %arg2[%c0_1, %c0_2] : memref<140x20xf32, #tpu.memory_space<vmem>>, vector<140x20xf32>
    %cst = arith.constant dense<0.000000e+00> : vector<128x20xf32>
    %2 = tpu.matmul %0, %1, %cst {dimension_numbers = #tpu.dot_dimension_numbers<[1], [0], [0], [1], [0, 0, 1, 1], [], []>} : vector<128x140xf32>, vector<140x20xf32>, vector<128x20xf32> -> vector<128x20xf32>
    %c0_3 = arith.constant 0 : index
    %c0_4 = arith.constant 0 : index
    %3 = vector.load %arg3[%c0_3, %c0_4] : memref<1x20xf32, #tpu.memory_space<vmem>>, vector<1x20xf32>
    %4 = vector.broadcast %3 : vector<1x20xf32> to vector<128x20xf32>
    %5 = arith.addf %2, %4 : vector<128x20xf32>
    %6 = arith.negf %5 : vector<128x20xf32>
    %7 = math.exp %6 : vector<128x20xf32>
    %cst_5 = arith.constant 1.000000e+00 : f32
    %8 = vector.broadcast %cst_5 : f32 to vector<128x20xf32>
    %9 = arith.addf %8, %7 : vector<128x20xf32>
    %10 = arith.divf %8, %9 : vector<128x20xf32>
    %c0_6 = arith.constant 0 : index
    %c0_7 = arith.constant 0 : index
    %11 = vector.load %arg4[%c0_6, %c0_7] : memref<20x10xf32, #tpu.memory_space<vmem>>, vector<20x10xf32>
    %cst_8 = arith.constant dense<0.000000e+00> : vector<128x10xf32>
    %12 = tpu.matmul %10, %11, %cst_8 {dimension_numbers = #tpu.dot_dimension_numbers<[1], [0], [0], [1], [0, 0, 1, 1], [], []>} : vector<128x20xf32>, vector<20x10xf32>, vector<128x10xf32> -> vector<128x10xf32>
    %c0_9 = arith.constant 0 : index
    %c0_10 = arith.constant 0 : index
    %13 = vector.load %arg5[%c0_9, %c0_10] : memref<1x10xf32, #tpu.memory_space<vmem>>, vector<1x10xf32>
    %14 = vector.broadcast %13 : vector<1x10xf32> to vector<128x10xf32>
    %15 = arith.addf %12, %14 : vector<128x10xf32>
    %16 = vector.extract_strided_slice %15 {offsets = [0, 0], sizes = [128, 5], strides = [1, 1]} : vector<128x10xf32> to vector<128x5xf32>
    %17 = vector.extract_strided_slice %15 {offsets = [0, 5], sizes = [128, 5], strides = [1, 1]} : vector<128x10xf32> to vector<128x5xf32>
    %c0_11 = arith.constant 0 : index
    %c0_12 = arith.constant 0 : index
    %18 = vector.load %arg6[%c0_11, %c0_12] : memref<128x5xf32, #tpu.memory_space<vmem>>, vector<128x5xf32>
    %cst_13 = arith.constant 5.000000e-01 : f32
    %19 = vector.broadcast %cst_13 : f32 to vector<128x5xf32>
    %20 = arith.mulf %19, %17 : vector<128x5xf32>
    %21 = math.exp %20 : vector<128x5xf32>
    %22 = arith.mulf %18, %21 : vector<128x5xf32>
    %23 = arith.addf %22, %16 : vector<128x5xf32>
    %c0_14 = arith.constant 0 : index
    %c0_15 = arith.constant 0 : index
    %24 = vector.load %arg7[%c0_14, %c0_15] : memref<5x20xf32, #tpu.memory_space<vmem>>, vector<5x20xf32>
    %cst_16 = arith.constant dense<0.000000e+00> : vector<128x20xf32>
    %25 = tpu.matmul %23, %24, %cst_16 {dimension_numbers = #tpu.dot_dimension_numbers<[1], [0], [0], [1], [0, 0, 1, 1], [], []>} : vector<128x5xf32>, vector<5x20xf32>, vector<128x20xf32> -> vector<128x20xf32>
    %c0_17 = arith.constant 0 : index
    %c0_18 = arith.constant 0 : index
    %26 = vector.load %arg8[%c0_17, %c0_18] : memref<1x20xf32, #tpu.memory_space<vmem>>, vector<1x20xf32>
    %27 = vector.broadcast %26 : vector<1x20xf32> to vector<128x20xf32>
    %28 = arith.addf %25, %27 : vector<128x20xf32>
    %29 = arith.negf %28 : vector<128x20xf32>
    %30 = math.exp %29 : vector<128x20xf32>
    %cst_19 = arith.constant 1.000000e+00 : f32
    %31 = vector.broadcast %cst_19 : f32 to vector<128x20xf32>
    %32 = arith.addf %31, %30 : vector<128x20xf32>
    %33 = arith.divf %31, %32 : vector<128x20xf32>
    %c0_20 = arith.constant 0 : index
    %c0_21 = arith.constant 0 : index
    %34 = vector.load %arg9[%c0_20, %c0_21] : memref<20x140xf32, #tpu.memory_space<vmem>>, vector<20x140xf32>
    %cst_22 = arith.constant dense<0.000000e+00> : vector<128x140xf32>
    %35 = tpu.matmul %33, %34, %cst_22 {dimension_numbers = #tpu.dot_dimension_numbers<[1], [0], [0], [1], [0, 0, 1, 1], [], []>} : vector<128x20xf32>, vector<20x140xf32>, vector<128x140xf32> -> vector<128x140xf32>
    %c0_23 = arith.constant 0 : index
    %c0_24 = arith.constant 0 : index
    %36 = vector.load %arg10[%c0_23, %c0_24] : memref<1x140xf32, #tpu.memory_space<vmem>>, vector<1x140xf32>
    %37 = vector.broadcast %36 : vector<1x140xf32> to vector<128x140xf32>
    %38 = arith.addf %35, %37 : vector<128x140xf32>
    %c0_25 = arith.constant 0 : index
    %c0_26 = arith.constant 0 : index
    %39 = vector.load %arg11[%c0_25, %c0_26] : memref<128x140xf32, #tpu.memory_space<vmem>>, vector<128x140xf32>
    tpu.vector_store %arg11[%c0_25, %c0_26], %38 {strides = array<i32>} : memref<128x140xf32, #tpu.memory_space<vmem>>, vector<128x140xf32>,
    %c0_27 = arith.constant 0 : index
    %c0_28 = arith.constant 0 : index
    %40 = vector.load %arg12[%c0_27, %c0_28] : memref<128x10xf32, #tpu.memory_space<vmem>>, vector<128x10xf32>
    tpu.vector_store %arg12[%c0_27, %c0_28], %15 {strides = array<i32>} : memref<128x10xf32, #tpu.memory_space<vmem>>, vector<128x10xf32>,
    return
  }
  func.func @transform_0(%arg0: i32) -> (i32, i32) {
    %c0_i32 = arith.constant 0 : i32
    %c0_i32_0 = arith.constant 0 : i32
    return %arg0, %c0_i32 : i32, i32
  }
  func.func @transform_1(%arg0: i32) -> (i32, i32) {
    %c0_i32 = arith.constant 0 : i32
    %c0_i32_0 = arith.constant 0 : i32
    %c0_i32_1 = arith.constant 0 : i32
    return %c0_i32, %c0_i32_0 : i32, i32
  }
  func.func @transform_2(%arg0: i32) -> (i32, i32) {
    %c0_i32 = arith.constant 0 : i32
    %c0_i32_0 = arith.constant 0 : i32
    %c0_i32_1 = arith.constant 0 : i32
    return %c0_i32, %c0_i32_0 : i32, i32
  }
  func.func @transform_3(%arg0: i32) -> (i32, i32) {
    %c0_i32 = arith.constant 0 : i32
    %c0_i32_0 = arith.constant 0 : i32
    %c0_i32_1 = arith.constant 0 : i32
    return %c0_i32, %c0_i32_0 : i32, i32
  }
  func.func @transform_4(%arg0: i32) -> (i32, i32) {
    %c0_i32 = arith.constant 0 : i32
    %c0_i32_0 = arith.constant 0 : i32
    %c0_i32_1 = arith.constant 0 : i32
    return %c0_i32, %c0_i32_0 : i32, i32
  }
  func.func @transform_5(%arg0: i32) -> (i32, i32) {
    %c0_i32 = arith.constant 0 : i32
    %c0_i32_0 = arith.constant 0 : i32
    return %arg0, %c0_i32 : i32, i32
  }
  func.func @transform_6(%arg0: i32) -> (i32, i32) {
    %c0_i32 = arith.constant 0 : i32
    %c0_i32_0 = arith.constant 0 : i32
    %c0_i32_1 = arith.constant 0 : i32
    return %c0_i32, %c0_i32_0 : i32, i32
  }
  func.func @transform_7(%arg0: i32) -> (i32, i32) {
    %c0_i32 = arith.constant 0 : i32
    %c0_i32_0 = arith.constant 0 : i32
    %c0_i32_1 = arith.constant 0 : i32
    return %c0_i32, %c0_i32_0 : i32, i32
  }
  func.func @transform_8(%arg0: i32) -> (i32, i32) {
    %c0_i32 = arith.constant 0 : i32
    %c0_i32_0 = arith.constant 0 : i32
    %c0_i32_1 = arith.constant 0 : i32
    return %c0_i32, %c0_i32_0 : i32, i32
  }
  func.func @transform_9(%arg0: i32) -> (i32, i32) {
    %c0_i32 = arith.constant 0 : i32
    %c0_i32_0 = arith.constant 0 : i32
    %c0_i32_1 = arith.constant 0 : i32
    return %c0_i32, %c0_i32_0 : i32, i32
  }
  func.func @transform_10(%arg0: i32) -> (i32, i32) {
    %c0_i32 = arith.constant 0 : i32
    %c0_i32_0 = arith.constant 0 : i32
    return %arg0, %c0_i32 : i32, i32
  }
  func.func @transform_11(%arg0: i32) -> (i32, i32) {
    %c0_i32 = arith.constant 0 : i32
    %c0_i32_0 = arith.constant 0 : i32
    return %arg0, %c0_i32 : i32, i32
  }
}

</mosaic_0001>

<bundles_post_ra>
// kernel: vmd_vae_dnn_forward.1
= control target key start
LH: loop header
LB: loop body
LE: loop exit
PB: predicated region body
PF: predicated region fallthrough
CT: control target
= control target key end

     0   :  { %s4074_s0 = inlined_call_operand.hbm [shape: f32[384,140], index: 0, kind: input, shape index: {}]   ;;  %s4075_s1 = inlined_call_operand.hbm [shape: f32[140,20], index: 1, kind: input, shape index: {}]   ;;  %s4076_s2 = inlined_call_operand.hbm [shape: f32[1,20], index: 2, kind: input, shape index: {}]   ;;  %s4077_s3 = inlined_call_operand.hbm [shape: f32[20,10], index: 3, kind: input, shape index: {}]   ;;  %s4078_s4 = inlined_call_operand.hbm [shape: f32[1,10], index: 4, kind: input, shape index: {}]   ;;  %s4079_s5 = inlined_call_operand.hbm [shape: f32[384,5], index: 5, kind: input, shape index: {}]   ;;  %s4080_s6 = inlined_call_operand.hbm [shape: f32[5,20], index: 6, kind: input, shape index: {}]   ;;  %s4081_s7 = inlined_call_operand.hbm [shape: f32[1,20], index: 7, kind: input, shape index: {}]   ;;  %s4082_s8 = inlined_call_operand.hbm [shape: f32[20,140], index: 8, kind: input, shape index: {}]   ;;  %s4083_s9 = inlined_call_operand.hbm [shape: f32[1,140], index: 9, kind: input, shape index: {}]   ;;  %s4084_s10 = inlined_call_operand.hbm [shape: f32[384,140], index: 10, kind: output, shape index: {0}]   ;;  %s4085_s11 = inlined_call_operand.hbm [shape: f32[384,10], index: 11, kind: output, shape index: {1}]  }
   0x1   :  { %4096 = sst [smem:[#allocation32_spill]] %s4074_s0 }
   0x2   :  { %4097 = sst [smem:[#allocation33_spill]] %s4075_s1 }
   0x3   :  { %4098 = sst [smem:[#allocation34_spill]] %s4076_s2 }
   0x4   :  { %4099 = sst [smem:[#allocation35_spill]] %s4077_s3 }
   0x5   :  { %4100 = sst [smem:[#allocation36_spill]] %s4078_s4 }
   0x6   :  { %4101 = sst [smem:[#allocation37_spill]] %s4080_s6 }
   0x7   :  { %4102 = sst [smem:[#allocation38_spill]] %s4084_s10 }
   0x8   :  { %4103 = sst [smem:[#allocation39_spill]] %s4085_s11 }
   0x9   :  { %17 = vsyncpa [#allocation3], 0 }
   0xa   :  { %19 = vsyncpa [#allocation3 + $0x1], 0 }
   0xb   :  { %20 = vsyncpa [#allocation6], 0 }
   0xc   :  { %21 = vsyncpa [#allocation9], 0 }
   0xd   :  { %22 = vsyncpa [#allocation12], 0 }
   0xe   :  { %24 = vsyncpa [#allocation12 + $0x1], 0 }
   0xf   :  { %25 = vsyncpa [#allocation15], 0 }
  0x10   :  { %26 = vsyncpa [#allocation18], 0 }
  0x11   :  { %27 = vsyncpa [#allocation4], 0 }
  0x12   :  { %29 = vsyncpa [#allocation4 + $0x1], 0 }
  0x13   :  { %30 = vsyncpa [#allocation21], 0 }
  0x14   :  { %32 = vsyncpa [#allocation21 + $0x1], 0  ;;  %s3192_s17 = smov 0   ;;  %s3194_s18 = smov 0  }
  0x15   :  { %s3196_s19 = smov 0   ;;  %s3198_s20 = smov 0  }
  0x16 LB: > { %s3108_s21 = smov [#allocation5]   ;;  %s3213_s23 = sadd.s32 4294967295, %s3106_s20   ;;  %s3106_s20 = sphi %s3198_s20, %s4144_s20   ;;  %s3102_s19 = sphi %s3196_s19, %s4143_s19   ;;  %s3098_s18 = sphi %s3194_s18, %s4142_s18   ;;  %s3094_s17 = sphi %s3192_s17, %s4141_s17  }
  0x17   : > { %s327_s22 = sshll.u32 %s3108_s21, 4  ;;  %p2110_p0 = scmp.ge.s32.totalorder %s3106_s20, 1  ;;  %s3218_s22 = int_to_ptr.vmem [resolvable:$true] %s327_s22 }
  0x18   : > { %p4090_p1 = scmp.eq.s32.totalorder %s3213_s23, 0  ;;  %p315_p2 = scmp.lt.s32.totalorder %s3106_s20, 4 }
  0x19   : > { %s3109_s25 = smov [#allocation8]   ;;  %s3110_s28 = smov [#allocation13]  }
  0x1a   : > { %p3220_p3 = pnand %p2110_p0, %p315_p2  ;;  %s351_s26 = sshll.u32 %s3109_s25, 4  ;;  %s3232_s26 = int_to_ptr.vmem [resolvable:$true] %s351_s26 }
  0x1b   : > { %s376_s29 = sshll.u32 %s3110_s28, 4  ;;  %s4107_s1 = sld [smem:[#allocation33_spill]]  ;;  %s3234_s29 = int_to_ptr.vmem [resolvable:$true] %s376_s29 }
  0x1c   : > { %s4104_s24 = scalar_select %p3220_p3, 1, 0 }
  0x1d   : > { %p2431_p4 = pneg %p3220_p3 }
  0x1e   : > { %4105 = sst [smem:[#allocation31_spill]] %s4104_s24 }
  0x1f   : > { %p3228_p5 = pnand %p2431_p4, %p4090_p1 }
  0x21   : > { %s2700_s13 = scalar_lea.hbm %s4107_s1, 2304  ;;  %p3244_p7 = pneg %p3228_p5 }
  0x22   : > { %p2701_p6 = scmp.ne.s32.totalorder %s4107_s1, %s2700_s13  ;;  %p2707_p10 = scmp.lt.u32.totalorder %s2700_s13, %s4107_s1 }
  0x24   : > { %p2703_p8 = pnand %p3244_p7, %p2701_p6 }
  0x26   : > { %p2704_p9 = pneg %p2703_p8 }
  0x28   : > { %p2709_p11 = pnand %p2707_p10, %p2704_p9 }
  0x2a   : > { %2712 = shalt.err (!%p2709_p11)
}
  0x2b   : > { %s2713_s28 = scalar_lea.vmem %s3218_s22, 2304  ;;  %p2721_p2 = scmp.lt.s32.totalorder %s3218_s22, %s3218_s22 }
  0x2c   : > { %p2714_p12 = scmp.ne.s32.totalorder %s3218_s22, %s2713_s28  ;;  %p2722_p4 = scmp.lt.s32.totalorder %s2713_s28, %s2713_s28 }
  0x2e   : > { %p2716_p13 = pnand %p2714_p12, %p3244_p7  ;;  %p2723_p6 = por %p2722_p4, %p2721_p2 }
  0x30   : > { %p2717_p0 = pneg %p2716_p13 }
  0x32   : > { %p2724_p8 = pnand %p2723_p6, %p2717_p0 }
  0x34   : > { %2727 = shalt.err (!%p2724_p8)
}
  0x35   : > { %s4089_s30 = smov 128   ;;  %s4092_s12 = smov 8  }
  0x36   : > { %2434 = dma.hbm_to_vmem [thread:$0]  (!%p3228_p5), %s4107_s1, 2304, %s3218_s22, [#allocation6], %s4089_s30, %s4089_s30, %s4092_s12  }
  0x37   : > { %s4109_s3 = sld [smem:[#allocation35_spill]] }
  0x3d   : > { %s2728_s25 = scalar_lea.hbm %s4109_s3, 384 }
  0x3e   : > { %p2729_p9 = scmp.ne.s32.totalorder %s4109_s3, %s2728_s25  ;;  %p2735_p12 = scmp.lt.u32.totalorder %s2728_s25, %s4109_s3 }
  0x40   : > { %p2731_p10 = pnand %p2729_p9, %p3244_p7 }
  0x42   : > { %p2732_p11 = pneg %p2731_p10 }
  0x44   : > { %p2737_p13 = pnand %p2735_p12, %p2732_p11 }
  0x46   : > { %2740 = shalt.err (!%p2737_p13)
}
  0x47   : > { %s2741_s22 = scalar_lea.vmem %s3232_s26, 384  ;;  %p2749_p6 = scmp.lt.s32.totalorder %s3232_s26, %s3232_s26 }
  0x48   : > { %p2742_p0 = scmp.ne.s32.totalorder %s3232_s26, %s2741_s22  ;;  %p2750_p8 = scmp.lt.s32.totalorder %s2741_s22, %s2741_s22 }
  0x4a   : > { %p2744_p2 = pnand %p2742_p0, %p3244_p7  ;;  %p2751_p9 = por %p2750_p8, %p2749_p6 }
  0x4c   : > { %p2745_p4 = pneg %p2744_p2 }
  0x4e   : > { %p2752_p10 = pnand %p2751_p9, %p2745_p4 }
  0x50   : > { %2755 = shalt.err (!%p2752_p10)
}
  0x51   : > { %2440 = dma.hbm_to_vmem [thread:$0]  (!%p3228_p5), %s4109_s3, 384, %s3232_s26, [#allocation9], %s4089_s30, %s4089_s30, %s4092_s12  }
  0x52   : > { %s4110_s6 = sld [smem:[#allocation37_spill]] }
  0x58   : > { %s2756_s14 = scalar_lea.hbm %s4110_s6, 128 }
  0x59   : > { %p2757_p11 = scmp.ne.s32.totalorder %s4110_s6, %s2756_s14  ;;  %p2763_p0 = scmp.lt.u32.totalorder %s2756_s14, %s4110_s6 }
  0x5b   : > { %p2759_p12 = pnand %p2757_p11, %p3244_p7 }
  0x5d   : > { %p2760_p13 = pneg %p2759_p12 }
  0x5f   : > { %p2765_p2 = pnand %p2763_p0, %p2760_p13 }
  0x61   : > { %2768 = shalt.err (!%p2765_p2)
}
  0x62   : > { %s2769_s26 = scalar_lea.vmem %s3234_s29, 128  ;;  %p2777_p9 = scmp.lt.s32.totalorder %s3234_s29, %s3234_s29 }
  0x63   : > { %p2770_p4 = scmp.ne.s32.totalorder %s3234_s29, %s2769_s26  ;;  %p2778_p10 = scmp.lt.s32.totalorder %s2769_s26, %s2769_s26 }
  0x65   : > { %p2772_p6 = pnand %p2770_p4, %p3244_p7  ;;  %p2779_p11 = por %p2778_p10, %p2777_p9 }
  0x67   : > { %p2773_p8 = pneg %p2772_p6 }
  0x69   : > { %p2780_p12 = pnand %p2779_p11, %p2773_p8 }
  0x6b   : > { %2783 = shalt.err (!%p2780_p12)
}
  0x6c   : > { %2446 = dma.hbm_to_vmem [thread:$0]  (!%p3228_p5), %s4110_s6, 128, %s3234_s29, [#allocation12]  }
  0x6d   : > { %s3113_s11 = smov [#allocation14]   ;;  %s3114_s13 = smov [#allocation7]  }
  0x6e   : > { %s387_s24 = sshll.u32 %s3113_s11, 4  ;;  %s341_s14 = sshll.u32 %s3114_s13, 4  ;;  %s388_s24 = int_to_ptr.vmem [resolvable:$true] %s387_s24  ;;  %s342_s14 = int_to_ptr.vmem [resolvable:$true] %s341_s14 }
  0x6f   : > { %s2784_s25 = scalar_lea.hbm %s4081_s7, 16 }
  0x70   : > { %p2785_p13 = scmp.ne.s32.totalorder %s4081_s7, %s2784_s25  ;;  %p2791_p4 = scmp.lt.u32.totalorder %s2784_s25, %s4081_s7 }
  0x72   : > { %p2787_p0 = pnand %p2785_p13, %p3244_p7 }
  0x74   : > { %p2788_p2 = pneg %p2787_p0 }
  0x76   : > { %p2793_p6 = pnand %p2791_p4, %p2788_p2 }
  0x78   : > { %2796 = shalt.err (!%p2793_p6)
}
  0x79   : > { %s2797_s29 = scalar_lea.vmem %s388_s24, 16  ;;  %s2804_s10 = scalar_lea.vmem %s388_s24, 32 }
  0x7a   : > { %p2798_p8 = scmp.ne.s32.totalorder %s388_s24, %s2797_s29  ;;  %p2805_p11 = scmp.lt.s32.totalorder %s388_s24, %s388_s24 }
  0x7b   : > { %p2806_p12 = scmp.lt.s32.totalorder %s2804_s10, %s2797_s29 }
  0x7c   : > { %p2800_p9 = pnand %p2798_p8, %p3244_p7 }
  0x7d   : > { %p2807_p1 = por %p2806_p12, %p2805_p11 }
  0x7e   : > { %p2801_p10 = pneg %p2800_p9 }
  0x80   : > { %p2808_p3 = pnand %p2807_p1, %p2801_p10 }
  0x82   : > { %2811 = shalt.err (!%p2808_p3)
}
  0x83   : > { %2449 = dma.hbm_to_vmem [thread:$0]  (!%p3228_p5), %s4081_s7, 16, %s388_s24, [#allocation15]  }
  0x84   : > { %s4111_s2 = sld [smem:[#allocation34_spill]] }
  0x8a   : > { %s2812_s21 = scalar_lea.hbm %s4111_s2, 16 }
  0x8b   : > { %p2813_p13 = scmp.ne.s32.totalorder %s4111_s2, %s2812_s21  ;;  %p2819_p3 = scmp.lt.u32.totalorder %s2812_s21, %s4111_s2 }
  0x8d   : > { %p2815_p0 = pnand %p2813_p13, %p3244_p7 }
  0x8f   : > { %p2816_p1 = pneg %p2815_p0 }
  0x91   : > { %p2821_p2 = pnand %p2819_p3, %p2816_p1 }
  0x93   : > { %2824 = shalt.err (!%p2821_p2)
}
  0x94   : > { %s2825_s29 = scalar_lea.vmem %s342_s14, 16  ;;  %s2832_s24 = scalar_lea.vmem %s342_s14, 32 }
  0x95   : > { %p2826_p4 = scmp.ne.s32.totalorder %s342_s14, %s2825_s29  ;;  %p2833_p9 = scmp.lt.s32.totalorder %s342_s14, %s342_s14 }
  0x96   : > { %p2834_p10 = scmp.lt.s32.totalorder %s2832_s24, %s2825_s29 }
  0x97   : > { %p2828_p6 = pnand %p2826_p4, %p3244_p7 }
  0x98   : > { %p2835_p11 = por %p2834_p10, %p2833_p9 }
  0x99   : > { %p2829_p8 = pneg %p2828_p6 }
  0x9b   : > { %p2836_p12 = pnand %p2835_p11, %p2829_p8 }
  0x9d   : > { %2839 = shalt.err (!%p2836_p12)
}
  0x9e   : > { %2437 = dma.hbm_to_vmem [thread:$0]  (!%p3228_p5), %s4111_s2, 16, %s342_s14, [#allocation6]  }
  0x9f   : > { %s3115_s13 = smov [#allocation10]   ;;  %s3116_s15 = smov [#allocation16]  }
  0xa0   : > { %s365_s30 = sshll.u32 %s3115_s13, 4  ;;  %s397_s21 = sshll.u32 %s3116_s15, 4  ;;  %s366_s30 = int_to_ptr.vmem [resolvable:$true] %s365_s30  ;;  %s398_s21 = int_to_ptr.vmem [resolvable:$true] %s397_s21 }
  0xa1   : > { %s4112_s4 = sld [smem:[#allocation36_spill]] }
  0xa7   : > { %s2840_s26 = scalar_lea.hbm %s4112_s4, 16 }
  0xa8   : > { %p2841_p13 = scmp.ne.s32.totalorder %s4112_s4, %s2840_s26  ;;  %p2847_p3 = scmp.lt.u32.totalorder %s2840_s26, %s4112_s4 }
  0xaa   : > { %p2843_p0 = pnand %p2841_p13, %p3244_p7 }
  0xac   : > { %p2844_p1 = pneg %p2843_p0 }
  0xae   : > { %p2849_p2 = pnand %p2847_p3, %p2844_p1 }
  0xb0   : > { %2852 = shalt.err (!%p2849_p2)
}
  0xb1   : > { %s2853_s14 = scalar_lea.vmem %s366_s30, 16  ;;  %s2860_s11 = scalar_lea.vmem %s366_s30, 32 }
  0xb2   : > { %p2854_p4 = scmp.ne.s32.totalorder %s366_s30, %s2853_s14  ;;  %p2861_p9 = scmp.lt.s32.totalorder %s366_s30, %s366_s30 }
  0xb3   : > { %p2862_p10 = scmp.lt.s32.totalorder %s2860_s11, %s2853_s14 }
  0xb4   : > { %p2856_p6 = pnand %p2854_p4, %p3244_p7 }
  0xb5   : > { %p2863_p11 = por %p2862_p10, %p2861_p9 }
  0xb6   : > { %p2857_p8 = pneg %p2856_p6 }
  0xb8   : > { %p2864_p12 = pnand %p2863_p11, %p2857_p8 }
  0xba   : > { %2867 = shalt.err (!%p2864_p12)
}
  0xbb   : > { %2443 = dma.hbm_to_vmem [thread:$0]  (!%p3228_p5), %s4112_s4, 16, %s366_s30, [#allocation9]  }
  0xbc   : > { %s2868_s26 = scalar_lea.hbm %s4082_s8, 768 }
  0xbd   : > { %p2869_p13 = scmp.ne.s32.totalorder %s4082_s8, %s2868_s26  ;;  %p2875_p3 = scmp.lt.u32.totalorder %s2868_s26, %s4082_s8 }
  0xbf   : > { %p2871_p0 = pnand %p2869_p13, %p3244_p7 }
  0xc1   : > { %p2872_p1 = pneg %p2871_p0 }
  0xc3   : > { %p2877_p2 = pnand %p2875_p3, %p2872_p1 }
  0xc5   : > { %2880 = shalt.err (!%p2877_p2)
}
  0xc6   : > { %s2881_s14 = scalar_lea.vmem %s398_s21, 768  ;;  %p2889_p9 = scmp.lt.s32.totalorder %s398_s21, %s398_s21 }
  0xc7   : > { %p2882_p4 = scmp.ne.s32.totalorder %s398_s21, %s2881_s14  ;;  %p2890_p10 = scmp.lt.s32.totalorder %s2881_s14, %s2881_s14 }
  0xc9   : > { %p2884_p6 = pnand %p2882_p4, %p3244_p7  ;;  %p2891_p11 = por %p2890_p10, %p2889_p9 }
  0xcb   : > { %p2885_p8 = pneg %p2884_p6 }
  0xcd   : > { %p2892_p12 = pnand %p2891_p11, %p2885_p8 }
  0xcf   : > { %2895 = shalt.err (!%p2892_p12)
}
  0xd0   : > { %s4093_s30 = smov 256   ;;  %s4094_s11 = smov 16  }
  0xd1   : > { %2452 = dma.hbm_to_vmem [thread:$0]  (!%p3228_p5), %s4082_s8, 768, %s398_s21, [#allocation15], %s4093_s30, %s4093_s30, %s4094_s11  }
  0xd2   : > { %s3119_s25 = smov [#allocation17]   ;;  %s2896_s29 = scalar_lea.hbm %s4083_s9, 32 }
  0xd3   : > { %s411_s28 = sshll.u32 %s3119_s25, 4  ;;  %p2897_p13 = scmp.ne.s32.totalorder %s4083_s9, %s2896_s29  ;;  %s412_s28 = int_to_ptr.vmem [resolvable:$true] %s411_s28 }
  0xd4   : > { %p2903_p3 = scmp.lt.u32.totalorder %s2896_s29, %s4083_s9 }
  0xd5   : > { %p2899_p0 = pnand %p2897_p13, %p3244_p7 }
  0xd7   : > { %p2900_p1 = pneg %p2899_p0 }
  0xd9   : > { %p2905_p2 = pnand %p2903_p3, %p2900_p1 }
  0xdb   : > { %2908 = shalt.err (!%p2905_p2)
}
  0xdc   : > { %s2909_s21 = scalar_lea.vmem %s412_s28, 32  ;;  %p2917_p9 = scmp.lt.s32.totalorder %s412_s28, %s412_s28 }
  0xdd   : > { %p2910_p4 = scmp.ne.s32.totalorder %s412_s28, %s2909_s21  ;;  %p2918_p10 = scmp.lt.s32.totalorder %s2909_s21, %s2909_s21 }
  0xdf   : > { %p2912_p6 = pnand %p2910_p4, %p3244_p7  ;;  %p2919_p11 = por %p2918_p10, %p2917_p9 }
  0xe1   : > { %p2913_p8 = pneg %p2912_p6 }
  0xe3   : > { %p2920_p12 = pnand %p2919_p11, %p2913_p8 }
  0xe5   : > { %2923 = shalt.err (!%p2920_p12)
}
  0xe6   : > { %2455 = dma.hbm_to_vmem [thread:$0]  (!%p3228_p5), %s4083_s9, 32, %s412_s28, [#allocation18]  }
  0xe7   : > { %s2109_s16 = sadd.s32 4294967294, %s3106_s20   ;;  %s3412_s27 = sadd.s32 1, %s3106_s20  }
  0xe8   : > { %s42_s12 = ssub.s32 %s3106_s20, %s3412_s27  ;;  %s45_s25 = sadd.s32 1, %s3102_s19 }
  0xe9   : > { %p43_p7 = scmp.eq.s32.totalorder %s42_s12, 0  ;;  %p52_p13 = scmp.ne.s32.totalorder %s3102_s19, %s3098_s18 }
  0xea   : > { %p53_p0 = scmp.eq.s32.totalorder %s3106_s20, 0  ;;  %p58_p1 = scmp.ne.s32.totalorder %s3098_s18, %s3094_s17 }
  0xeb   : > { %s3423_s26 = scalar_select %p43_p7, %s3102_s19, %s45_s25  }
  0xec   : > { %p3425_p3 = por %p53_p0, %p52_p13  ;;  %p4114_p2 = scmp.eq.s32.totalorder %s3213_s23, 0 }
  0xed   : > { %p276_p4 = scmp.eq.s32.totalorder %s3213_s23, 2  ;;  %p282_p6 = scmp.eq.s32.totalorder %s2109_s16, 2 }
  0xee   : > { %p3431_p5 = por %p4114_p2, %p58_p1  ;;  %p2478_p8 = scmp.lt.s32.totalorder %s3106_s20, 3 }
  0xef   : > { %s3438_s29 = sand.u32 1, %s3102_s19   ;;  %p3440_p9 = por %p276_p4, %p52_p13 }
  0xf0   : > { %p3444_p10 = por %p282_p6, %p58_p1  ;;  %s2120_s14 = sshll.u32 %s3438_s29, 8 }
  0xf1   : > { %s4116_s24 = scalar_select %p3440_p9, 1, 0 }
  0xf2   : > { %s4117_s10 = scalar_select %p3444_p10, 1, 0 }
  0xf3   : > { %s2254_s21 = sshll.u32 %s3106_s20, 12  ;;  %s4118_s0 = sld [smem:[#allocation32_spill]] }
  0xf4   : > { %s426_s12 = scalar_lea.vmem [#allocation2], %s2120_s14  ;;  %p3459_p11 = pnand %p2478_p8, %p3425_p3 }
  0xf5   : > { %s434_s25 = sshll.u32 %s426_s12, 4  ;;  %s2124_s1 = sshll.u32 %s3438_s29, 7  ;;  %s3455_s25 = int_to_ptr.vmem [resolvable:$true] %s434_s25 }
  0xf6   : > { %s423_s13 = scalar_lea.sflag [#allocation3], %s3438_s29  ;;  %p2926_p7 = pneg %p3459_p11 }
  0xf9   : > { %s3453_s16 = scalar_lea.hbm %s4118_s0, %s2254_s21  ;;  %s2929_s22 = scalar_lea.hbm %s4118_s0, 12288 }
  0xfa   : > { %s2924_s21 = scalar_lea.hbm %s3453_s16, 4096  ;;  %p2930_p1 = scmp.lt.u32.totalorder %s3453_s16, %s4118_s0 }
  0xfb   : > { %p2925_p12 = scmp.ne.s32.totalorder %s3453_s16, %s2924_s21  ;;  %p2931_p3 = scmp.lt.u32.totalorder %s2929_s22, %s2924_s21 }
  0xfc   : > { %p2933_p4 = scmp.lt.u32.totalorder %s2924_s21, %s3453_s16 }
  0xfd   : > { %p2927_p13 = pnand %p2926_p7, %p2925_p12  ;;  %p2932_p2 = por %p2931_p3, %p2930_p1 }
  0xff   : > { %p2928_p0 = pneg %p2927_p13  ;;  %p2934_p6 = por %p2933_p4, %p2932_p2 }
 0x101   : > { %p2935_p8 = pnand %p2934_p6, %p2928_p0 }
 0x103   : > { %2938 = shalt.err (!%p2935_p8)
}
 0x104   : > { %s2939_s11 = scalar_lea.vmem %s3455_s25, 4096  ;;  %s3120_s14 = smov [#allocation2]  }
 0x105   : > { %p2940_p12 = scmp.ne.s32.totalorder %s3455_s25, %s2939_s11  ;;  %s2944_s15 = sshll.u32 %s3120_s14, 4  ;;  %s2945_s15 = int_to_ptr.vmem [resolvable:$false] %s2944_s15 }
 0x106   : > { %s2946_s2 = scalar_lea.vmem %s2945_s15, 8192  ;;  %p2947_p9 = scmp.lt.s32.totalorder %s3455_s25, %s2945_s15 }
 0x107   : > { %p2942_p13 = pnand %p2940_p12, %p2926_p7  ;;  %p2948_p1 = scmp.lt.s32.totalorder %s2946_s2, %s2939_s11 }
 0x109   : > { %p2943_p10 = pneg %p2942_p13  ;;  %p2949_p3 = por %p2948_p1, %p2947_p9 }
 0x10b   : > { %p2950_p2 = pnand %p2949_p3, %p2943_p10 }
 0x10d   : > { %2953 = shalt.err (!%p2950_p2)
}
 0x10e   : > { %s4120_s21 = smov 16   ;;  %s4121_s22 = smov 256  }
 0x10f   : > { %2459 = dma.hbm_to_vmem [thread:$0]  (!%p3459_p11), %s3453_s16, 4096, %s3455_s25, %s423_s13, %s4121_s22, %s4121_s22, %s4120_s21  }
 0x110   : > { %s2255_s12 = sshll.u32 %s3106_s20, 11  ;;  %s448_s2 = scalar_lea.vmem [#allocation11], %s2124_s1 }
 0x111   : > { %s3500_s15 = scalar_lea.hbm %s4079_s5, %s2255_s12  ;;  %s455_s0 = sshll.u32 %s448_s2, 4  ;;  %s3504_s0 = int_to_ptr.vmem [resolvable:$true] %s455_s0 }
 0x112   : > { %s4122_s3 = sand.u32 1, %s3106_s20   ;;  %s2954_s6 = scalar_lea.hbm %s3500_s15, 2048 }
 0x113   : > { %s3508_s4 = scalar_lea.sflag [#allocation12], %s4122_s3  ;;  %p2955_p9 = scmp.ne.s32.totalorder %s3500_s15, %s2954_s6 }
 0x114   : > { %s2959_s29 = scalar_lea.hbm %s4079_s5, 6144  ;;  %p2960_p4 = scmp.lt.u32.totalorder %s3500_s15, %s4079_s5 }
 0x115   : > { %p2957_p10 = pnand %p2955_p9, %p2926_p7  ;;  %p2961_p6 = scmp.lt.u32.totalorder %s2959_s29, %s2954_s6 }
 0x116   : > { %p2963_p12 = scmp.lt.u32.totalorder %s2954_s6, %s3500_s15 }
 0x117   : > { %p2958_p0 = pneg %p2957_p10  ;;  %p2962_p8 = por %p2961_p6, %p2960_p4 }
 0x119   : > { %p2964_p13 = por %p2963_p12, %p2962_p8 }
 0x11b   : > { %p2965_p1 = pnand %p2964_p13, %p2958_p0 }
 0x11d   : > { %2968 = shalt.err (!%p2965_p1)
}
 0x11e   : > { %s2969_s1 = scalar_lea.vmem %s3504_s0, 2048  ;;  %s3121_s3 = smov [#allocation11]  }
 0x11f   : > { %p2970_p3 = scmp.ne.s32.totalorder %s3504_s0, %s2969_s1  ;;  %s2974_s22 = sshll.u32 %s3121_s3, 4  ;;  %s2975_s22 = int_to_ptr.vmem [resolvable:$false] %s2974_s22 }
 0x120   : > { %s2976_s12 = scalar_lea.vmem %s2975_s22, 4096  ;;  %p2977_p10 = scmp.lt.s32.totalorder %s3504_s0, %s2975_s22 }
 0x121   : > { %p2972_p2 = pnand %p2970_p3, %p2926_p7  ;;  %p2978_p4 = scmp.lt.s32.totalorder %s2976_s12, %s2969_s1 }
 0x123   : > { %p2973_p9 = pneg %p2972_p2  ;;  %p2979_p6 = por %p2978_p4, %p2977_p10 }
 0x125   : > { %p2980_p8 = pnand %p2979_p6, %p2973_p9 }
 0x127   : > { %2983 = shalt.err (!%p2980_p8)
}
 0x128   : > { %s4123_s6 = smov 8   ;;  %s4124_s14 = smov 128  }
 0x129   : > { %2462 = dma.hbm_to_vmem [thread:$0]  (!%p3459_p11), %s3500_s15, 2048, %s3504_s0, %s3508_s4, %s4124_s14, %s4124_s14, %s4123_s6  }
 0x12a   : > { %s4125_s11 = sld [smem:[#allocation31_spill]] }
 0x130   : > { %p4126_p7 = scmp.ne.s32.totalorder %s4125_s11, 0 }
 0x131   : > { %s3540_s2 = sand.u32 (!%p4126_p7), 1, %s3098_s18  }
 0x132   : > { %467 = sbr.rel (%p4126_p7) target bundleno = 1499 (0x5db), region = 60  ;;  %s2128_s16 = sshll.u32 (!%p4126_p7), %s3540_s2, 8 }
 0x133   : > { %s470_s25 = scalar_lea.sflag (!%p4126_p7), [#allocation3], %s3540_s2  ;;  %s3546_s30 = scalar_lea.vmem (!%p4126_p7), [#allocation2], %s2128_s16 }
 0x139   : > { %3057 = dma.done.wait (%p3431_p5), %s470_s25, 4096  }
 0x13a   : > { %3059 = vsyncadd (%p3431_p5), %s470_s25, 4294963200  ;;  %p4127_p11 = scmp.eq.s32.totalorder %s3213_s23, 0 }
 0x13c   : > { %3061 = dma.done.wait (%p4127_p11), [#allocation6], 2320   ;;  %p4128_p0 = pmov %p4127_p11 }
 0x13e   : > { %3063 = vsyncadd (%p4128_p0), [#allocation6], 4294964976  ;;  %p4129_p12 = pmov %p4128_p0 }
 0x13f   : > { %p4130_p13 = pmov %p4128_p0 }
 0x140   : > { %3065 = dma.done.wait (%p4129_p12), [#allocation9], 400  }
 0x141   : > { %3067 = vsyncadd (%p4130_p13), [#allocation9], 4294966896  ;;  %s494_s0 = sand.u32 1, %s3213_s23   ;;  %s2133_s4 = sshll.u32 %s3540_s2, 7 }
 0x142   : > { %s495_s15 = scalar_lea.sflag [#allocation12], %s494_s0  ;;  %s3564_s29 = scalar_lea.vmem [#allocation11], %s2133_s4 }
 0x143   : > { %3069 = dma.done.wait (%p3431_p5), %s495_s15, 2048  }
 0x144   : > { %3071 = vsyncadd (%p3431_p5), %s495_s15, 4294965248  ;;  %p4131_p1 = pmov %p4128_p0 }
 0x145   : > { %p4132_p3 = pmov %p4128_p0 }
 0x146   : > { %3073 = dma.done.wait (%p4131_p1), [#allocation12], 128  }
 0x147   : > { %3075 = vsyncadd (%p4132_p3), [#allocation12], 4294967168  ;;  %p4133_p2 = pmov %p4128_p0 }
 0x148   : > { %p4134_p9 = pmov %p4128_p0 }
 0x149   : > { %3077 = dma.done.wait (%p4133_p2), [#allocation15], 784  }
 0x14a   : > { %3079 = vsyncadd (%p4134_p9), [#allocation15], 4294966512  ;;  %p4135_p10 = pmov %p4128_p0 }
 0x14b   : > { %p4136_p4 = pmov %p4128_p0 }
 0x14c   : > { %3081 = dma.done.wait (%p4135_p10), [#allocation18], 32  }
 0x14d   : > { %3083 = vsyncadd (%p4136_p4), [#allocation18], 4294967264  ;;  %v3122_v0 = vmov 0.0|0.0   ;;  %v599_v1 = vld [vmem:[#allocation5] sm:$0xff]  ;;  %v600_v2 = vld [vmem:[#allocation5 + $0x8] sm:$0xff]  ;;  %vm624_vm0 = vcmask 97280  }
 0x14e   : > { %2351 = vmatprep.subr.bf16.mxu0 %v3122_v0  ;;  %v601_v3 = vld [vmem:[#allocation5 + $0x10] sm:$0xff]  ;;  %v2352_v4 = vpack.c.bf16 %v600_v2, %v599_v1  ;;  %v602_v5 = vld [vmem:[#allocation5 + $0x18] sm:$0xff]  ;;  %v603_v7 = vld [vmem:[#allocation5 + $0x20] sm:$0xff]  ;;  %vm673_vm1 = vcmask 1043456   ;;  %vm3123_vm2 = vmmov 1   ;;  %vm928_vm4 = vcmask 162816  }
 0x14f   : > { %v2355_v6 = vpack.c.bf16 %v602_v5, %v601_v3  ;;  %v604_v8 = vld [vmem:[#allocation5 + $0x28] sm:$0xff]  ;;  %v605_v11 = vld [vmem:[#allocation5 + $0x30] sm:$0xff]  ;;  %v606_v12 = vld [vmem:[#allocation5 + $0x38] sm:$0xff]  ;;  %vm1342_vm5 = vcmask 1044480   ;;  %vm1852_vm6 = vcmask 80896   ;;  %s3679_s28 = scalar_lea.vmem [#allocation20], %s2133_s4 }
 0x150   : > { %2353 = vmatpush1.bf16.msra.mxu0 %v2352_v4  ;;  %v568_v9 = vld [vmem:[%s3546_s30 + $0x8] sm:$0xff]  ;;  %v2358_v10 = vpack.c.bf16 %v604_v8, %v603_v7  ;;  %v2361_v13 = vpack.c.bf16 %v606_v12, %v605_v11  ;;  %v607_v14 = vld [vmem:[#allocation5 + $0x40] sm:$0xff]  ;;  %v609_v17 = vld [vmem:[#allocation5 + $0x50] sm:$0xff]  ;;  %s3124_s13 = smov 123   ;;  %vm1293_vm7 = vcmask 39936   ;;  %s2258_s21 = sshll.u32 %s3213_s23, 11 }
 0x151   : > { %2354 = vmatprep.subr.bf16.mxu0 %v3122_v0  ;;  %2142 = vmatprep.mubr.msk.f32.mxu0 %vm624_vm0, %v568_v9  ;;  %v608_v15 = vld [vmem:[#allocation5 + $0x48] sm:$0xff]  ;;  %v610_v18 = vld [vmem:[#allocation5 + $0x58] sm:$0xff]  ;;  %v611_v23 = vld [vmem:[#allocation5 + $0x60] sm:$0xff]  ;;  %s1905_s1 = sshll.u32 %s3679_s28, 4  ;;  %s4137_s12 = sld [smem:[#allocation39_spill]]  ;;  %s3910_s1 = int_to_ptr.vmem [resolvable:$true] %s1905_s1 }
 0x152   : > { %v2364_v16 = vpack.c.bf16 %v608_v15, %v607_v14  ;;  %v918_v19 = vld [vmem:[#allocation8] sm:$0xff]  ;;  %v919_v20 = vld [vmem:[#allocation8 + $0x8] sm:$0xff]  ;;  %v2367_v22 = vpack.c.bf16 %v610_v18, %v609_v17  ;;  %v612_v24 = vld [vmem:[#allocation5 + $0x68] sm:$0xff]  ;;  %s1875_s14 = scalar_lea.sflag [#allocation21], %s3540_s2  ;;  %s2984_s11 = scalar_lea.vmem %s3910_s1, 2048 }
 0x153   : > { %v2379_v21 = vpack.c.bf16 %v919_v20, %v918_v19  ;;  %v2370_v25 = vpack.c.bf16 %v612_v24, %v611_v23  ;;  %v613_v26 = vld [vmem:[#allocation5 + $0x70] sm:$0xff]  ;;  %v614_v27 = vld [vmem:[#allocation5 + $0x78] sm:$0xff]  ;;  %v615_v29 = vld [vmem:[#allocation5 + $0x80] sm:$0xff]  ;;  %p2985_p5 = scmp.ne.s32.totalorder %s3910_s1, %s2984_s11  ;;  %p4138_p6 = scmp.ne.s32.totalorder %s4116_s24, 0 }
 0x154   : > { %2356 = vmatpush1.bf16.msra.mxu0 %v2355_v6  ;;  %v2373_v28 = vpack.c.bf16 %v614_v27, %v613_v26  ;;  %v616_v30 = vld [vmem:[#allocation5 + $0x88] sm:$0xf]  ;;  %vm2377_vm3 = vmpackc.low %vm673_vm1, %vm3123_vm2  ;;  %v567_v32 = vld [vmem:[%s3546_s30] sm:$0xff]  ;;  %s3126_s25 = smov [#allocation20]  }
 0x155   : > { %2357 = vmatprep.subr.bf16.mxu0 %v3122_v0  ;;  %2387 = vmatprep.subr.bf16.mxu1 %v2379_v21  ;;  %v2376_v31 = vpack.c.bf16 %v616_v30, %v615_v29  ;;  %v570_v33 = vld [vmem:[%s3546_s30 + $0x18] sm:$0xff]  ;;  %v569_v34 = vld [vmem:[%s3546_s30 + $0x10] sm:$0xff]  ;;  %v572_v35 = vld [vmem:[%s3546_s30 + $0x28] sm:$0xff]  ;;  %p2986_p8 = pnand %p2985_p5, %p4138_p6 }
 0x156   : > { %2389 = vmatpush3.bf16.msra.mxu1 %v2379_v21  ;;  %v571_v36 = vld [vmem:[%s3546_s30 + $0x20] sm:$0xff]  ;;  %v574_v37 = vld [vmem:[%s3546_s30 + $0x38] sm:$0xff]  ;;  %v573_v38 = vld [vmem:[%s3546_s30 + $0x30] sm:$0xff] }
 0x157   : > { %v576_v39 = vld [vmem:[%s3546_s30 + $0x48] sm:$0xff]  ;;  %v575_v40 = vld [vmem:[%s3546_s30 + $0x40] sm:$0xff]  ;;  %v578_v41 = vld [vmem:[%s3546_s30 + $0x58] sm:$0xff]  ;;  %s3908_s6 = scalar_lea.hbm %s4137_s12, %s2258_s21  ;;  %p2987_p7 = pneg %p2986_p8 }
 0x158   : > { %2359 = vmatpush1.bf16.msra.mxu0 %v2358_v10  ;;  %v577_v42 = vld [vmem:[%s3546_s30 + $0x50] sm:$0xff]  ;;  %v580_v43 = vld [vmem:[%s3546_s30 + $0x68] sm:$0xff]  ;;  %v579_v44 = vld [vmem:[%s3546_s30 + $0x60] sm:$0xff] }
 0x159   : > { %2360 = vmatprep.subr.bf16.mxu0 %v3122_v0  ;;  %v582_v45 = vld [vmem:[%s3546_s30 + $0x78] sm:$0xff]  ;;  %v581_v46 = vld [vmem:[%s3546_s30 + $0x70] sm:$0xff]  ;;  %v584_v47 = vld [vmem:[%s3546_s30 + $0x88] sm:$0xff] }
 0x15a   : > { %v583_v48 = vld [vmem:[%s3546_s30 + $0x80] sm:$0xff]  ;;  %v586_v49 = vld [vmem:[%s3546_s30 + $0x98] sm:$0xff]  ;;  %v585_v50 = vld [vmem:[%s3546_s30 + $0x90] sm:$0xff] }
 0x15b   : > { %v588_v51 = vld [vmem:[%s3546_s30 + $0xa8] sm:$0xff]  ;;  %v587_v52 = vld [vmem:[%s3546_s30 + $0xa0] sm:$0xff]  ;;  %v590_v53 = vld [vmem:[%s3546_s30 + $0xb8] sm:$0xff] }
 0x15c   : > { %2362 = vmatpush1.bf16.msra.mxu0 %v2361_v13  ;;  %v589_v54 = vld [vmem:[%s3546_s30 + $0xb0] sm:$0xff]  ;;  %v592_v55 = vld [vmem:[%s3546_s30 + $0xc8] sm:$0xff]  ;;  %v591_v56 = vld [vmem:[%s3546_s30 + $0xc0] sm:$0xff] }
 0x15d   : > { %2363 = vmatprep.subr.bf16.mxu0 %v3122_v0  ;;  %v594_v57 = vld [vmem:[%s3546_s30 + $0xd8] sm:$0xff]  ;;  %v593_v58 = vld [vmem:[%s3546_s30 + $0xd0] sm:$0xff]  ;;  %v596_v59 = vld [vmem:[%s3546_s30 + $0xe8] sm:$0xff] }
 0x15e   : > { %v595_v60 = vld [vmem:[%s3546_s30 + $0xe0] sm:$0xff]  ;;  %v598_v61 = vld [vmem:[%s3546_s30 + $0xf8] sm:$0xff]  ;;  %v597_v62 = vld [vmem:[%s3546_s30 + $0xf0] sm:$0xff]  ;;  %s2988_s30 = sshll.u32 %s3126_s25, 4  ;;  %s2989_s30 = int_to_ptr.vmem [resolvable:$false] %s2988_s30 }
 0x15f   : > { %v920_v63 = vld [vmem:[#allocation8 + $0x10] sm:$0xf]  ;;  %s2990_s0 = scalar_lea.vmem %s2989_s30, 4096  ;;  %p2991_p11 = scmp.lt.s32.totalorder %s3910_s1, %s2989_s30 }
 0x160   : > { %2365 = vmatpush1.bf16.msra.mxu0 %v2364_v16  ;;  %2388 = vmatprep.subr.msk.mxu1 %vm673_vm1, %v920_v63  ;;  %p2992_p0 = scmp.lt.s32.totalorder %s2990_s0, %s2984_s11 }
 0x161   : > { %2366 = vmatprep.subr.bf16.mxu0 %v3122_v0  ;;  %2390 = vmatpush3.msk.msra.mxu1 %vm673_vm1, %v920_v63 }
 0x162   : > { %p2993_p12 = por %p2992_p0, %p2991_p11 }
 0x164   : > { %2368 = vmatpush1.bf16.msra.mxu0 %v2367_v22  ;;  %p2994_p13 = pnand %p2993_p12, %p2987_p7 }
 0x165   : > { %2369 = vmatprep.subr.bf16.mxu0 %v3122_v0 }
 0x168   : > { %2371 = vmatpush1.bf16.msra.mxu0 %v2370_v25 }
 0x169   : > { %2372 = vmatprep.subr.bf16.mxu0 %v3122_v0 }
 0x16c   : > { %2374 = vmatpush1.bf16.msra.mxu0 %v2373_v28 }
 0x16d   : > { %2375 = vmatprep.subr.bf16.mxu0 %v3122_v0  ;;  %v3635_v0 = vld [vmem:[#allocation7] ss:$0 sm:$0xff] }
 0x170   : > { %2378 = vmatpush1.bf16.msk.msra.mxu0 %vm2377_vm3, %v2376_v31 }
 0x171   : > { %2380 = vmatprep.subr.bf16.mxu0 %v2379_v21 }
 0x173   : > { %742 = vmatmul.mubr.f32.vlgmr.msra.gmra.mrb[0].mxu0 %v567_v32 }
 0x174   : > { %2143 = vmatprep.mubr.msk.f32.mxu0 %vm624_vm0, %v570_v33  ;;  %2382 = vmatpush3.bf16.msra.mxu0 %v2379_v21 }
 0x175   : > { %2299 = vmatprep.subr.msk.mxu0 %vm673_vm1, %v920_v63 }
 0x177   : > { %747 = vmatmul.mubr.f32.gmra.mrb[2].mxu0 %v569_v34 }
 0x178   : > { %2144 = vmatprep.mubr.msk.f32.mxu0 %vm624_vm0, %v572_v35  ;;  %2300 = vmatpush3.msk.msra.mxu0 %vm673_vm1, %v920_v63 }
 0x17b   : > { %752 = vmatmul.mubr.f32.gmra.mrb[4].mxu0 %v571_v36 }
 0x17c   : > { %2145 = vmatprep.mubr.msk.f32.mxu0 %vm624_vm0, %v574_v37 }
 0x17f   : > { %757 = vmatmul.mubr.f32.gmra.mrb[6].mxu0 %v573_v38 }
 0x180   : > { %2146 = vmatprep.mubr.msk.f32.mxu0 %vm624_vm0, %v576_v39 }
 0x183   : > { %762 = vmatmul.mubr.f32.gmra.mrb[8].mxu0 %v575_v40 }
 0x184   : > { %2147 = vmatprep.mubr.msk.f32.mxu0 %vm624_vm0, %v578_v41 }
 0x187   : > { %767 = vmatmul.mubr.f32.gmra.mrb[10].mxu0 %v577_v42 }
 0x188   : > { %2148 = vmatprep.mubr.msk.f32.mxu0 %vm624_vm0, %v580_v43 }
 0x18b   : > { %772 = vmatmul.mubr.f32.gmra.mrb[12].mxu0 %v579_v44 }
 0x18c   : > { %2149 = vmatprep.mubr.msk.f32.mxu0 %vm624_vm0, %v582_v45 }
 0x18f   : > { %777 = vmatmul.mubr.f32.gmra.mrb[14].mxu0 %v581_v46 }
 0x190   : > { %2150 = vmatprep.mubr.msk.f32.mxu0 %vm624_vm0, %v584_v47 }
 0x193   : > { %782 = vmatmul.mubr.f32.gmra.mrb[16].mxu0 %v583_v48 }
 0x194   : > { %2151 = vmatprep.mubr.msk.f32.mxu0 %vm624_vm0, %v586_v49 }
 0x197   : > { %787 = vmatmul.mubr.f32.gmra.mrb[18].mxu0 %v585_v50 }
 0x198   : > { %2152 = vmatprep.mubr.msk.f32.mxu0 %vm624_vm0, %v588_v51 }
 0x19b   : > { %792 = vmatmul.mubr.f32.gmra.mrb[20].mxu0 %v587_v52 }
 0x19c   : > { %2153 = vmatprep.mubr.msk.f32.mxu0 %vm624_vm0, %v590_v53 }
 0x19f   : > { %797 = vmatmul.mubr.f32.gmra.mrb[22].mxu0 %v589_v54 }
 0x1a0   : > { %2154 = vmatprep.mubr.msk.f32.mxu0 %vm624_vm0, %v592_v55 }
 0x1a3   : > { %802 = vmatmul.mubr.f32.gmra.mrb[24].mxu0 %v591_v56 }
 0x1a4   : > { %2155 = vmatprep.mubr.msk.f32.mxu0 %vm624_vm0, %v594_v57 }
 0x1a7   : > { %807 = vmatmul.mubr.f32.gmra.mrb[26].mxu0 %v593_v58 }
 0x1a8   : > { %2156 = vmatprep.mubr.msk.f32.mxu0 %vm624_vm0, %v596_v59 }
 0x1ab   : > { %812 = vmatmul.mubr.f32.gmra.mrb[28].mxu0 %v595_v60 }
 0x1ac   : > { %2157 = vmatprep.mubr.msk.f32.mxu0 %vm624_vm0, %v598_v61 }
 0x1af   : > { %817 = vmatmul.mubr.f32.gmra.mrb[30].mxu0 %v597_v62 }
 0x246   : > { %v743_v1 = vpop.f32.mrb[0].mxu0 }
 0x247   : > { %v744_v2 = vadd.f32 %v3635_v0, %v743_v1  ;;  %v745_v3 = vpop.f32.mrb[1].mxu0 }
 0x249   : > { %v2158_v4 = vmul.f32 -1.442695, %v744_v2 }
 0x24a   : > { %v748_v5 = vpop.f32.mrb[2].mxu0 }
 0x24b   : > { %2540 = vpow2.f32 %v2158_v4  ;;  %v749_v6 = vadd.f32 %v3635_v0, %v748_v5  ;;  %v750_v7 = vpop.f32.mrb[3].mxu0 }
 0x24d   : > { %v2159_v8 = vmul.f32 -1.442695, %v749_v6 }
 0x24e   : > { %v753_v9 = vpop.f32.mrb[4].mxu0 }
 0x24f   : > { %2542 = vpow2.f32 %v2159_v8  ;;  %v754_v10 = vadd.f32 %v3635_v0, %v753_v9  ;;  %v755_v11 = vpop.f32.mrb[5].mxu0 }
 0x251   : > { %v2160_v12 = vmul.f32 -1.442695, %v754_v10 }
 0x252   : > { %v758_v13 = vpop.f32.mrb[6].mxu0 }
 0x253   : > { %2544 = vpow2.f32 %v2160_v12  ;;  %v759_v14 = vadd.f32 %v3635_v0, %v758_v13  ;;  %v760_v15 = vpop.f32.mrb[7].mxu0 }
 0x255   : > { %v2541_v16 = vpop.eup %2540  ;;  %v2161_v17 = vmul.f32 -1.442695, %v759_v14 }
 0x256   : > { %v870_v18 = vadd.f32 1.0, %v2541_v16  ;;  %v763_v19 = vpop.f32.mrb[8].mxu0 }
 0x257   : > { %2546 = vpow2.f32 %v2161_v17  ;;  %v764_v20 = vadd.f32 %v3635_v0, %v763_v19  ;;  %v765_v21 = vpop.f32.mrb[9].mxu0 }
 0x258   : > { %2548 = vrcp.f32 %v870_v18 }
 0x259   : > { %v2543_v22 = vpop.eup %2542  ;;  %v2162_v23 = vmul.f32 -1.442695, %v764_v20 }
 0x25a   : > { %v871_v24 = vadd.f32 1.0, %v2543_v22  ;;  %v768_v25 = vpop.f32.mrb[10].mxu0 }
 0x25b   : > { %2550 = vpow2.f32 %v2162_v23  ;;  %v769_v26 = vadd.f32 %v3635_v0, %v768_v25  ;;  %v770_v27 = vpop.f32.mrb[11].mxu0 }
 0x25c   : > { %2552 = vrcp.f32 %v871_v24 }
 0x25d   : > { %v2545_v28 = vpop.eup %2544  ;;  %v2163_v29 = vmul.f32 -1.442695, %v769_v26 }
 0x25e   : > { %v872_v30 = vadd.f32 1.0, %v2545_v28  ;;  %v773_v31 = vpop.f32.mrb[12].mxu0 }
 0x25f   : > { %2554 = vpow2.f32 %v2163_v29  ;;  %v774_v32 = vadd.f32 %v3635_v0, %v773_v31  ;;  %v775_v33 = vpop.f32.mrb[13].mxu0 }
 0x260   : > { %2556 = vrcp.f32 %v872_v30 }
 0x261   : > { %v2547_v34 = vpop.eup %2546  ;;  %v2164_v35 = vmul.f32 -1.442695, %v774_v32 }
 0x262   : > { %v2549_v36 = vpop.eup %2548  ;;  %v873_v37 = vadd.f32 1.0, %v2547_v34  ;;  %v778_v38 = vpop.f32.mrb[14].mxu0 }
 0x263   : > { %2558 = vpow2.f32 %v2164_v35  ;;  %v779_v39 = vadd.f32 %v3635_v0, %v778_v38  ;;  %2301 = vmatprep.mubr.msk.f32.mxu0 %vm928_vm4, %v2549_v36  ;;  %v780_v40 = vpop.f32.mrb[15].mxu0 }
 0x264   : > { %2560 = vrcp.f32 %v873_v37 }
 0x265   : > { %v2551_v41 = vpop.eup %2550  ;;  %v2165_v42 = vmul.f32 -1.442695, %v779_v39 }
 0x266   : > { %v2553_v43 = vpop.eup %2552  ;;  %v874_v44 = vadd.f32 1.0, %v2551_v41  ;;  %v783_v45 = vpop.f32.mrb[16].mxu0 }
 0x267   : > { %2562 = vpow2.f32 %v2165_v42  ;;  %2302 = vmatmul.mubr.msk.f32.vlgmr.msra.gmra.mrb[32].mxu0 %vm928_vm4, %v2553_v43  ;;  %v784_v46 = vadd.f32 %v3635_v0, %v783_v45  ;;  %v785_v47 = vpop.f32.mrb[17].mxu0 }
 0x268   : > { %2564 = vrcp.f32 %v874_v44 }
 0x269   : > { %v2555_v48 = vpop.eup %2554  ;;  %v2166_v49 = vmul.f32 -1.442695, %v784_v46 }
 0x26a   : > { %v2557_v50 = vpop.eup %2556  ;;  %v875_v51 = vadd.f32 1.0, %v2555_v48  ;;  %v788_v52 = vpop.f32.mrb[18].mxu0 }
 0x26b   : > { %2566 = vpow2.f32 %v2166_v49  ;;  %v789_v53 = vadd.f32 %v3635_v0, %v788_v52  ;;  %2304 = vmatprep.mubr.msk.f32.mxu0 %vm928_vm4, %v2557_v50  ;;  %v790_v54 = vpop.f32.mrb[19].mxu0  ;;  %v1285_v49 = vld [vmem:[#allocation13] sm:$0x1f]  ;;  %v3669_v50 = vld [vmem:[#allocation10] ss:$0 sm:$0xff] }
 0x26c   : > { %2568 = vrcp.f32 %v875_v51  ;;  %2325 = vmatprep.subr.msk.mxu1 %vm1342_vm5, %v1285_v49 }
 0x26d   : > { %v2559_v55 = vpop.eup %2558  ;;  %v2167_v56 = vmul.f32 -1.442695, %v789_v53 }
 0x26e   : > { %v2561_v57 = vpop.eup %2560  ;;  %v876_v58 = vadd.f32 1.0, %v2559_v55  ;;  %v793_v59 = vpop.f32.mrb[20].mxu0 }
 0x26f   : > { %2570 = vpow2.f32 %v2167_v56  ;;  %2305 = vmatmul.mubr.msk.f32.gmra.mrb[34].mxu0 %vm928_vm4, %v2561_v57  ;;  %v794_v60 = vadd.f32 %v3635_v0, %v793_v59  ;;  %v795_v61 = vpop.f32.mrb[21].mxu0 }
 0x270   : > { %2572 = vrcp.f32 %v876_v58 }
 0x271   : > { %v2563_v62 = vpop.eup %2562  ;;  %v2168_v63 = vmul.f32 -1.442695, %v794_v60 }
 0x272   : > { %v2565_v1 = vpop.eup %2564  ;;  %v877_v2 = vadd.f32 1.0, %v2563_v62  ;;  %v798_v3 = vpop.f32.mrb[22].mxu0 }
 0x273   : > { %2574 = vpow2.f32 %v2168_v63  ;;  %v799_v4 = vadd.f32 %v3635_v0, %v798_v3  ;;  %v800_v5 = vpop.f32.mrb[23].mxu0  ;;  %2307 = vmatprep.mubr.msk.f32.mxu0 %vm928_vm4, %v2565_v1 }
 0x274   : > { %2576 = vrcp.f32 %v877_v2 }
 0x275   : > { %v2567_v6 = vpop.eup %2566  ;;  %v2169_v7 = vmul.f32 -1.442695, %v799_v4 }
 0x276   : > { %v2569_v8 = vpop.eup %2568  ;;  %v878_v9 = vadd.f32 1.0, %v2567_v6  ;;  %v803_v10 = vpop.f32.mrb[24].mxu0 }
 0x277   : > { %2578 = vpow2.f32 %v2169_v7  ;;  %2308 = vmatmul.mubr.msk.f32.gmra.mrb[36].mxu0 %vm928_vm4, %v2569_v8  ;;  %v804_v11 = vadd.f32 %v3635_v0, %v803_v10  ;;  %v805_v12 = vpop.f32.mrb[25].mxu0 }
 0x278   : > { %2580 = vrcp.f32 %v878_v9 }
 0x279   : > { %v2571_v13 = vpop.eup %2570  ;;  %v2170_v14 = vmul.f32 -1.442695, %v804_v11 }
 0x27a   : > { %v2573_v15 = vpop.eup %2572  ;;  %v879_v16 = vadd.f32 1.0, %v2571_v13  ;;  %v808_v17 = vpop.f32.mrb[26].mxu0 }
 0x27b   : > { %2582 = vpow2.f32 %v2170_v14  ;;  %v809_v18 = vadd.f32 %v3635_v0, %v808_v17  ;;  %v810_v19 = vpop.f32.mrb[27].mxu0  ;;  %2310 = vmatprep.mubr.msk.f32.mxu0 %vm928_vm4, %v2573_v15 }
 0x27c   : > { %2584 = vrcp.f32 %v879_v16 }
 0x27d   : > { %v2575_v20 = vpop.eup %2574  ;;  %v2171_v21 = vmul.f32 -1.442695, %v809_v18 }
 0x27e   : > { %v2577_v22 = vpop.eup %2576  ;;  %v880_v23 = vadd.f32 1.0, %v2575_v20  ;;  %v813_v24 = vpop.f32.mrb[28].mxu0 }
 0x27f   : > { %2586 = vpow2.f32 %v2171_v21  ;;  %2311 = vmatmul.mubr.msk.f32.gmra.mrb[38].mxu0 %vm928_vm4, %v2577_v22  ;;  %v814_v25 = vadd.f32 %v3635_v0, %v813_v24  ;;  %v815_v26 = vpop.f32.mrb[29].mxu0 }
 0x280   : > { %2588 = vrcp.f32 %v880_v23 }
 0x281   : > { %v2579_v27 = vpop.eup %2578  ;;  %v2172_v28 = vmul.f32 -1.442695, %v814_v25 }
 0x282   : > { %v2581_v29 = vpop.eup %2580  ;;  %v881_v30 = vadd.f32 1.0, %v2579_v27  ;;  %v818_v31 = vpop.f32.mrb[30].mxu0 }
 0x283   : > { %2590 = vpow2.f32 %v2172_v28  ;;  %v819_v32 = vadd.f32 %v3635_v0, %v818_v31  ;;  %v820_v33 = vpop.f32.mrb[31].mxu0  ;;  %2313 = vmatprep.mubr.msk.f32.mxu1 %vm928_vm4, %v2581_v29 }
 0x284   : > { %2592 = vrcp.f32 %v881_v30 }
 0x285   : > { %v2583_v34 = vpop.eup %2582  ;;  %v2173_v35 = vmul.f32 -1.442695, %v819_v32 }
 0x286   : > { %v2585_v36 = vpop.eup %2584  ;;  %v882_v37 = vadd.f32 1.0, %v2583_v34 }
 0x287   : > { %2594 = vpow2.f32 %v2173_v35  ;;  %2314 = vmatmul.mubr.msk.f32.vlgmr.msra.gmra.mrb[0].mxu1 %vm928_vm4, %v2585_v36 }
 0x288   : > { %2596 = vrcp.f32 %v882_v37  ;;  %2326 = vmatpush3.msk.msra.mxu1 %vm1342_vm5, %v1285_v49 }
 0x289   : > { %v2587_v38 = vpop.eup %2586 }
 0x28a   : > { %v2589_v39 = vpop.eup %2588  ;;  %v883_v40 = vadd.f32 1.0, %v2587_v38 }
 0x28b   : > { %2316 = vmatprep.mubr.msk.f32.mxu1 %vm928_vm4, %v2589_v39 }
 0x28c   : > { %2598 = vrcp.f32 %v883_v40 }
 0x28d   : > { %v2591_v41 = vpop.eup %2590 }
 0x28e   : > { %v2593_v0 = vpop.eup %2592  ;;  %v884_v42 = vadd.f32 1.0, %v2591_v41 }
 0x28f   : > { %2317 = vmatmul.mubr.msk.f32.gmra.mrb[2].mxu1 %vm928_vm4, %v2593_v0 }
 0x290   : > { %2600 = vrcp.f32 %v884_v42 }
 0x291   : > { %v2595_v43 = vpop.eup %2594 }
 0x292   : > { %v2597_v44 = vpop.eup %2596  ;;  %v885_v45 = vadd.f32 1.0, %v2595_v43 }
 0x293   : > { %2319 = vmatprep.mubr.msk.f32.mxu1 %vm928_vm4, %v2597_v44 }
 0x294   : > { %2602 = vrcp.f32 %v885_v45 }
 0x296   : > { %v2599_v46 = vpop.eup %2598 }
 0x297   : > { %2320 = vmatmul.mubr.msk.f32.gmra.mrb[4].mxu1 %vm928_vm4, %v2599_v46 }
 0x29a   : > { %v2601_v47 = vpop.eup %2600 }
 0x29b   : > { %2322 = vmatprep.mubr.msk.f32.mxu1 %vm928_vm4, %v2601_v47 }
 0x29e   : > { %v2603_v48 = vpop.eup %2602 }
 0x29f   : > { %2323 = vmatmul.mubr.msk.f32.gmra.mrb[6].mxu1 %vm928_vm4, %v2603_v48 }
 0x33a   : > { %v2303_v51 = vpop.f32.mrb[32].mxu0 }
 0x33b   : > { %v3672_v52 = vadd.f32 %v2303_v51, %v3669_v50  ;;  %v1046_v53 = vpop.f32.mrb[33].mxu0 }
 0x33c   : > { %v3675_v54 = vadd.f32 %v3669_v50, %v1046_v53 }
 0x33d   : > { %1854 = vst.msk [vmem:[%s3679_s28 + $0x8] sm:$0xff] %vm1852_vm6, %v3672_v52  ;;  %v1142_v55 = vmul.f32 0.5, %v3672_v52 }
 0x33e   : > { %v1141_v56 = vmul.f32 0.5, %v3675_v54  ;;  %1853 = vst.msk [vmem:[%s3679_s28] sm:$0xff] %vm1852_vm6, %v3675_v54 }
 0x33f   : > { %v1159_v58 = vmul.f32 1.442695, %v1142_v55 }
 0x340   : > { %v1157_v57 = vmul.f32 1.442695, %v1141_v56 }
 0x342   : > { %2604 = vpow2.f32 %v1157_v57  ;;  %v2306_v59 = vpop.f32.mrb[34].mxu0 }
 0x343   : > { %v3690_v60 = vadd.f32 %v2306_v59, %v3669_v50  ;;  %v1056_v61 = vpop.f32.mrb[35].mxu0  ;;  %2606 = vpow2.f32 %v1159_v58 }
 0x344   : > { %v3693_v62 = vadd.f32 %v3669_v50, %v1056_v61 }
 0x345   : > { %1856 = vst.msk [vmem:[%s3679_s28 + $0x18] sm:$0xff] %vm1852_vm6, %v3690_v60  ;;  %v1144_v63 = vmul.f32 0.5, %v3690_v60 }
 0x346   : > { %v1143_v1 = vmul.f32 0.5, %v3693_v62  ;;  %1855 = vst.msk [vmem:[%s3679_s28 + $0x10] sm:$0xff] %vm1852_vm6, %v3693_v62 }
 0x347   : > { %v1163_v3 = vmul.f32 1.442695, %v1144_v63 }
 0x348   : > { %v1161_v2 = vmul.f32 1.442695, %v1143_v1 }
 0x34a   : > { %2608 = vpow2.f32 %v1161_v2  ;;  %v2309_v4 = vpop.f32.mrb[36].mxu0 }
 0x34b   : > { %v3704_v5 = vadd.f32 %v2309_v4, %v3669_v50  ;;  %v1066_v6 = vpop.f32.mrb[37].mxu0  ;;  %2610 = vpow2.f32 %v1163_v3 }
 0x34c   : > { %v2605_v7 = vpop.eup %2604  ;;  %v3707_v8 = vadd.f32 %v3669_v50, %v1066_v6 }
 0x34d   : > { %v1146_v9 = vmul.f32 0.5, %v3704_v5  ;;  %1858 = vst.msk [vmem:[%s3679_s28 + $0x28] sm:$0xff] %vm1852_vm6, %v3704_v5  ;;  %1205 = vrot.lane.b32.xlu0 %v2605_v7, %s3124_s13  ;;  %v2607_v12 = vpop.eup %2606  ;;  %v1588_v7 = vld [vmem:[#allocation16 + $0x8] sm:$0xff] }
 0x34e   : > { %v1145_v10 = vmul.f32 0.5, %v3707_v8  ;;  %1857 = vst.msk [vmem:[%s3679_s28 + $0x20] sm:$0xff] %vm1852_vm6, %v3707_v8 }
 0x34f   : > { %v1167_v11 = vmul.f32 1.442695, %v1146_v9  ;;  %v1590_v9 = vld [vmem:[#allocation16 + $0x18] sm:$0xff] }
 0x350   : > { %v1165_v13 = vmul.f32 1.442695, %v1145_v10  ;;  %v2383_v10 = vpack.c.bf16 %v1590_v9, %v1588_v7 }
 0x351   : > { %2612 = vpow2.f32 %v1167_v11  ;;  %1207 = vrot.lane.b32.xlu0 %v2607_v12, %s3124_s13 }
 0x352   : > { %2614 = vpow2.f32 %v1165_v13  ;;  %v2312_v14 = vpop.f32.mrb[38].mxu0  ;;  %2384 = vmatprep.subr.bf16.mxu1 %v2383_v10  ;;  %v1125_v13 = vld [vmem:[%s3564_s29] sm:$0xff] }
 0x353   : > { %v3720_v15 = vadd.f32 %v2312_v14, %v3669_v50  ;;  %v1076_v16 = vpop.f32.mrb[39].mxu0 }
 0x354   : > { %v2609_v17 = vpop.eup %2608  ;;  %v3723_v18 = vadd.f32 %v3669_v50, %v1076_v16 }
 0x355   : > { %v1148_v19 = vmul.f32 0.5, %v3720_v15  ;;  %1860 = vst.msk [vmem:[%s3679_s28 + $0x38] sm:$0xff] %vm1852_vm6, %v3720_v15  ;;  %1209 = vrot.lane.b32.xlu1 %v2609_v17, %s3124_s13  ;;  %v2611_v22 = vpop.eup %2610  ;;  %v1126_v17 = vld [vmem:[%s3564_s29 + $0x8] sm:$0xff] }
 0x356   : > { %v1147_v20 = vmul.f32 0.5, %v3723_v18  ;;  %1859 = vst.msk [vmem:[%s3679_s28 + $0x30] sm:$0xff] %vm1852_vm6, %v3723_v18 }
 0x357   : > { %v1171_v21 = vmul.f32 1.442695, %v1148_v19 }
 0x358   : > { %v1169_v23 = vmul.f32 1.442695, %v1147_v20  ;;  %v1587_v20 = vld [vmem:[#allocation16] sm:$0xff] }
 0x359   : > { %2616 = vpow2.f32 %v1171_v21  ;;  %1211 = vrot.lane.b32.xlu1 %v2611_v22, %s3124_s13  ;;  %v1589_v21 = vld [vmem:[#allocation16 + $0x10] sm:$0xff] }
 0x35a   : > { %2618 = vpow2.f32 %v1169_v23  ;;  %v2315_v24 = vpop.f32.mrb[0].mxu1 }
 0x35b   : > { %v2613_v25 = vpop.eup %2612  ;;  %v3736_v26 = vadd.f32 %v2315_v24, %v3669_v50  ;;  %v1086_v27 = vpop.f32.mrb[1].mxu1  ;;  %v1127_v24 = vld [vmem:[%s3564_s29 + $0x10] sm:$0xff] }
 0x35c   : > { %v2615_v28 = vpop.eup %2614  ;;  %v3739_v29 = vadd.f32 %v3669_v50, %v1086_v27 }
 0x35d   : > { %v1150_v30 = vmul.f32 0.5, %v3736_v26  ;;  %1862 = vst.msk [vmem:[%s3679_s28 + $0x48] sm:$0xff] %vm1852_vm6, %v3736_v26  ;;  %1215 = vrot.lane.b32.xlu1 %v2613_v25, %s3124_s13  ;;  %1213 = vrot.lane.b32.xlu0 %v2615_v28, %s3124_s13  ;;  %v2385_v25 = vpack.c.bf16 %v1589_v21, %v1587_v20 }
 0x35e   : > { %v1149_v31 = vmul.f32 0.5, %v3739_v29  ;;  %1861 = vst.msk [vmem:[%s3679_s28 + $0x40] sm:$0xff] %vm1852_vm6, %v3739_v29 }
 0x35f   : > { %v1175_v32 = vmul.f32 1.442695, %v1150_v30 }
 0x360   : > { %v1173_v33 = vmul.f32 1.442695, %v1149_v31  ;;  %v1128_v31 = vld [vmem:[%s3564_s29 + $0x18] sm:$0xff] }
 0x361   : > { %2620 = vpow2.f32 %v1175_v32 }
 0x362   : > { %2622 = vpow2.f32 %v1173_v33  ;;  %v2318_v34 = vpop.f32.mrb[2].mxu1 }
 0x363   : > { %v2617_v35 = vpop.eup %2616  ;;  %v3752_v36 = vadd.f32 %v2318_v34, %v3669_v50  ;;  %v1096_v37 = vpop.f32.mrb[3].mxu1  ;;  %v1130_v34 = vld [vmem:[%s3564_s29 + $0x28] sm:$0xff] }
 0x364   : > { %v2619_v38 = vpop.eup %2618  ;;  %v3755_v39 = vadd.f32 %v3669_v50, %v1096_v37  ;;  %1219 = vrot.lane.b32.xlu1 %v2617_v35, %s3124_s13  ;;  %v1129_v35 = vld [vmem:[%s3564_s29 + $0x20] sm:$0xff] }
 0x365   : > { %v1152_v40 = vmul.f32 0.5, %v3752_v36  ;;  %1864 = vst.msk [vmem:[%s3679_s28 + $0x58] sm:$0xff] %vm1852_vm6, %v3752_v36  ;;  %1217 = vrot.lane.b32.xlu0 %v2619_v38, %s3124_s13 }
 0x366   : > { %v1151_v41 = vmul.f32 0.5, %v3755_v39  ;;  %1863 = vst.msk [vmem:[%s3679_s28 + $0x50] sm:$0xff] %vm1852_vm6, %v3755_v39 }
 0x367   : > { %v1179_v0 = vmul.f32 1.442695, %v1152_v40 }
 0x368   : > { %v1177_v42 = vmul.f32 1.442695, %v1151_v41 }
 0x369   : > { %2624 = vpow2.f32 %v1179_v0 }
 0x36a   : > { %2626 = vpow2.f32 %v1177_v42  ;;  %v2321_v43 = vpop.f32.mrb[4].mxu1  ;;  %v1132_v42 = vld [vmem:[%s3564_s29 + $0x38] sm:$0xff] }
 0x36b   : > { %v2621_v44 = vpop.eup %2620  ;;  %v3768_v45 = vadd.f32 %v2321_v43, %v3669_v50  ;;  %v1106_v46 = vpop.f32.mrb[5].mxu1  ;;  %v1131_v43 = vld [vmem:[%s3564_s29 + $0x30] sm:$0xff] }
 0x36c   : > { %v2623_v47 = vpop.eup %2622  ;;  %v3771_v48 = vadd.f32 %v3669_v50, %v1106_v46  ;;  %1223 = vrot.lane.b32.xlu1 %v2621_v44, %s3124_s13 }
 0x36d   : > { %v1154_v49 = vmul.f32 0.5, %v3768_v45  ;;  %1866 = vst.msk [vmem:[%s3679_s28 + $0x68] sm:$0xff] %vm1852_vm6, %v3768_v45  ;;  %1221 = vrot.lane.b32.xlu0 %v2623_v47, %s3124_s13 }
 0x36e   : > { %v1153_v51 = vmul.f32 0.5, %v3771_v48  ;;  %1865 = vst.msk [vmem:[%s3679_s28 + $0x60] sm:$0xff] %vm1852_vm6, %v3771_v48 }
 0x36f   : > { %v1183_v53 = vmul.f32 1.442695, %v1154_v49 }
 0x370   : > { %v1181_v55 = vmul.f32 1.442695, %v1153_v51 }
 0x371   : > { %2628 = vpow2.f32 %v1183_v53 }
 0x372   : > { %2630 = vpow2.f32 %v1181_v55  ;;  %v2324_v56 = vpop.f32.mrb[6].mxu1 }
 0x373   : > { %v2625_v57 = vpop.eup %2624  ;;  %v3784_v58 = vadd.f32 %v2324_v56, %v3669_v50  ;;  %v1116_v59 = vpop.f32.mrb[7].mxu1 }
 0x374   : > { %v2627_v61 = vpop.eup %2626  ;;  %v3787_v63 = vadd.f32 %v3669_v50, %v1116_v59  ;;  %1227 = vrot.lane.b32.xlu1 %v2625_v57, %s3124_s13 }
 0x375   : > { %v1156_v1 = vmul.f32 0.5, %v3784_v58  ;;  %1868 = vst.msk [vmem:[%s3679_s28 + $0x78] sm:$0xff] %vm1852_vm6, %v3784_v58  ;;  %1225 = vrot.lane.b32.xlu0 %v2627_v61, %s3124_s13 }
 0x376   : > { %v1155_v2 = vmul.f32 0.5, %v3787_v63  ;;  %1867 = vst.msk [vmem:[%s3679_s28 + $0x70] sm:$0xff] %vm1852_vm6, %v3787_v63 }
 0x377   : > { %v1187_v3 = vmul.f32 1.442695, %v1156_v1 }
 0x378   : > { %v1185_v4 = vmul.f32 1.442695, %v1155_v2 }
 0x379   : > { %2632 = vpow2.f32 %v1187_v3 }
 0x37a   : > { %2634 = vpow2.f32 %v1185_v4 }
 0x37b   : > { %v2629_v50 = vpop.eup %2628 }
 0x37c   : > { %v2631_v6 = vpop.eup %2630  ;;  %1231 = vrot.lane.b32.xlu1 %v2629_v50, %s3124_s13 }
 0x37d   : > { %1229 = vrot.lane.b32.xlu0 %v2631_v6, %s3124_s13 }
 0x383   : > { %v2633_v11 = vpop.eup %2632 }
 0x384   : > { %v2635_v12 = vpop.eup %2634  ;;  %1235 = vrot.lane.b32.xlu1 %v2633_v11, %s3124_s13 }
 0x385   : > { %1233 = vrot.lane.b32.xlu0 %v2635_v12, %s3124_s13 }
 0x3bf   : > { %v1206_v14 = vpop.permute.xlu0 %1205 }
 0x3c0   : > { %v1253_v16 = vmul.f32 %v1206_v14, %v1125_v13  ;;  %v1140_v14 = vld [vmem:[%s3564_s29 + $0x78] sm:$0xff] }
 0x3c2   : > { %v1269_v19 = vadd.f32 %v1253_v16, %v3675_v54 }
 0x3c3   : > { %v1208_v22 = vpop.permute.xlu0 %1207 }
 0x3c4   : > { %v1254_v23 = vmul.f32 %v1208_v22, %v1126_v17  ;;  %2327 = vmatprep.mubr.msk.f32.mxu1 %vm1293_vm7, %v1269_v19  ;;  %v3125_v22 = vmov 0.0  }
 0x3c6   : > { %v1270_v27 = vadd.f32 %v1254_v23, %v3672_v52  ;;  %v3854_v23 = vld [vmem:[#allocation14] ss:$0 sm:$0xff] }
 0x3c7   : > { %v1210_v28 = vpop.permute.xlu1 %1209 }
 0x3c8   : > { %v1255_v30 = vmul.f32 %v1210_v28, %v1127_v24  ;;  %2328 = vmatmul.mubr.msk.f32.vlgmr.msra.gmra.mrb[8].mxu1 %vm1293_vm7, %v1270_v27 }
 0x3c9   : > { %2386 = vmatpush1.bf16.msra.mxu1 %v2385_v25 }
 0x3ca   : > { %v1271_v54 = vadd.f32 %v1255_v30, %v3693_v62 }
 0x3cb   : > { %v1212_v32 = vpop.permute.xlu1 %1211 }
 0x3cc   : > { %v1256_v33 = vmul.f32 %v1212_v32, %v1128_v31  ;;  %2330 = vmatprep.mubr.msk.f32.mxu1 %vm1293_vm7, %v1271_v54 }
 0x3ce   : > { %v1272_v37 = vadd.f32 %v1256_v33, %v3690_v60 }
 0x3cf   : > { %v1216_v38 = vpop.permute.xlu1 %1215  ;;  %v1214_v52 = vpop.permute.xlu0 %1213 }
 0x3d0   : > { %v1258_v40 = vmul.f32 %v1216_v38, %v1130_v34  ;;  %v1257_v41 = vmul.f32 %v1214_v52, %v1129_v35  ;;  %2331 = vmatmul.mubr.msk.f32.gmra.mrb[10].mxu1 %vm1293_vm7, %v1272_v37 }
 0x3d2   : > { %v1274_v0 = vadd.f32 %v1258_v40, %v3704_v5  ;;  %v1273_v62 = vadd.f32 %v1257_v41, %v3707_v8  ;;  %v1134_v5 = vld [vmem:[%s3564_s29 + $0x48] sm:$0xff]  ;;  %v1133_v8 = vld [vmem:[%s3564_s29 + $0x40] sm:$0xff] }
 0x3d4   : > { %2333 = vmatprep.mubr.msk.f32.mxu1 %vm1293_vm7, %v1273_v62 }
 0x3d5   : > { %2334 = vmatmul.mubr.msk.f32.gmra.mrb[12].mxu1 %vm1293_vm7, %v1274_v0 }
 0x3d6   : > { %v1220_v44 = vpop.permute.xlu1 %1219 }
 0x3d7   : > { %v1260_v60 = vmul.f32 %v1220_v44, %v1132_v42  ;;  %v1218_v46 = vpop.permute.xlu0 %1217 }
 0x3d8   : > { %v1259_v47 = vmul.f32 %v1218_v46, %v1131_v43 }
 0x3d9   : > { %v1276_v51 = vadd.f32 %v1260_v60, %v3720_v15  ;;  %v1135_v15 = vld [vmem:[%s3564_s29 + $0x50] sm:$0xff] }
 0x3da   : > { %v1275_v49 = vadd.f32 %v1259_v47, %v3723_v18  ;;  %v1136_v18 = vld [vmem:[%s3564_s29 + $0x58] sm:$0xff] }
 0x3dc   : > { %2336 = vmatprep.mubr.msk.f32.mxu1 %vm1293_vm7, %v1275_v49 }
 0x3dd   : > { %2337 = vmatmul.mubr.msk.f32.gmra.mrb[14].mxu1 %vm1293_vm7, %v1276_v51 }
 0x3de   : > { %v1224_v53 = vpop.permute.xlu1 %1223 }
 0x3df   : > { %v1262_v55 = vmul.f32 %v1224_v53, %v1134_v5  ;;  %v1222_v56 = vpop.permute.xlu0 %1221 }
 0x3e0   : > { %v1261_v57 = vmul.f32 %v1222_v56, %v1133_v8 }
 0x3e1   : > { %v1278_v61 = vadd.f32 %v1262_v55, %v3736_v26  ;;  %v1137_v26 = vld [vmem:[%s3564_s29 + $0x60] sm:$0xff] }
 0x3e2   : > { %v1277_v59 = vadd.f32 %v1261_v57, %v3739_v29  ;;  %v1138_v29 = vld [vmem:[%s3564_s29 + $0x68] sm:$0xff] }
 0x3e4   : > { %2339 = vmatprep.mubr.msk.f32.mxu1 %vm1293_vm7, %v1277_v59 }
 0x3e5   : > { %2340 = vmatmul.mubr.msk.f32.gmra.mrb[16].mxu1 %vm1293_vm7, %v1278_v61 }
 0x3e6   : > { %v1228_v1 = vpop.permute.xlu1 %1227 }
 0x3e7   : > { %v1264_v2 = vmul.f32 %v1228_v1, %v1136_v18  ;;  %v1226_v3 = vpop.permute.xlu0 %1225 }
 0x3e8   : > { %v1263_v4 = vmul.f32 %v1226_v3, %v1135_v15 }
 0x3e9   : > { %v1280_v6 = vadd.f32 %v1264_v2, %v3752_v36  ;;  %v1139_v36 = vld [vmem:[%s3564_s29 + $0x70] sm:$0xff] }
 0x3ea   : > { %v1279_v50 = vadd.f32 %v1263_v4, %v3755_v39 }
 0x3ec   : > { %2342 = vmatprep.mubr.msk.f32.mxu1 %vm1293_vm7, %v1279_v50 }
 0x3ed   : > { %2343 = vmatmul.mubr.msk.f32.gmra.mrb[18].mxu1 %vm1293_vm7, %v1280_v6 }
 0x3ee   : > { %v1232_v7 = vpop.permute.xlu1 %1231 }
 0x3ef   : > { %v1266_v9 = vmul.f32 %v1232_v7, %v1138_v29  ;;  %v1230_v10 = vpop.permute.xlu0 %1229 }
 0x3f0   : > { %v1265_v11 = vmul.f32 %v1230_v10, %v1137_v26 }
 0x3f1   : > { %v1282_v13 = vadd.f32 %v1266_v9, %v3768_v45  ;;  %v1591_v45 = vld [vmem:[#allocation16 + $0x20] sm:$0xf] }
 0x3f2   : > { %v1281_v12 = vadd.f32 %v1265_v11, %v3771_v48  ;;  %v1592_v48 = vld [vmem:[#allocation16 + $0x28] sm:$0xf] }
 0x3f3   : > { %2226 = vmatprep.subr.msk.mxu1 %vm673_vm1, %v1592_v48 }
 0x3f4   : > { %2345 = vmatprep.mubr.msk.f32.mxu1 %vm1293_vm7, %v1281_v12  ;;  %2227 = vmatpush1.msk.msra.mxu1 %vm673_vm1, %v1591_v45 }
 0x3f5   : > { %2346 = vmatmul.mubr.msk.f32.gmra.mrb[20].mxu1 %vm1293_vm7, %v1282_v13 }
 0x3f6   : > { %v1236_v39 = vpop.permute.xlu1 %1235 }
 0x3f7   : > { %v1268_v16 = vmul.f32 %v1236_v39, %v1140_v14  ;;  %v1234_v17 = vpop.permute.xlu0 %1233 }
 0x3f8   : > { %v1267_v19 = vmul.f32 %v1234_v17, %v1139_v36 }
 0x3f9   : > { %v1284_v21 = vadd.f32 %v1268_v16, %v3784_v58 }
 0x3fa   : > { %v1283_v20 = vadd.f32 %v1267_v19, %v3787_v63 }
 0x3fc   : > { %2348 = vmatprep.mubr.msk.f32.mxu1 %vm1293_vm7, %v1283_v20 }
 0x3fd   : > { %2349 = vmatmul.mubr.msk.f32.gmra.mrb[22].mxu1 %vm1293_vm7, %v1284_v21 }
 0x3fe   : > { %1723 = vmatprep.mubr.f32.mxu1 %v3125_v22 }
 0x49b   : > { %v2329_v24 = vpop.f32.mrb[8].mxu1 }
 0x49c   : > { %v1418_v63 = vadd.f32 %v2329_v24, %v3854_v23  ;;  %v1412_v25 = vpop.f32.mrb[9].mxu1 }
 0x49d   : > { %v1413_v58 = vadd.f32 %v3854_v23, %v1412_v25 }
 0x49e   : > { %v2211_v27 = vmul.f32 -1.442695, %v1418_v63 }
 0x49f   : > { %v2210_v28 = vmul.f32 -1.442695, %v1413_v58 }
 0x4a0   : > { %2636 = vpow2.f32 %v2211_v27 }
 0x4a1   : > { %2638 = vpow2.f32 %v2210_v28 }
 0x4a3   : > { %v2332_v30 = vpop.f32.mrb[10].mxu1 }
 0x4a4   : > { %v1428_v31 = vadd.f32 %v2332_v30, %v3854_v23  ;;  %v1422_v54 = vpop.f32.mrb[11].mxu1 }
 0x4a5   : > { %v1423_v32 = vadd.f32 %v3854_v23, %v1422_v54 }
 0x4a6   : > { %v2213_v33 = vmul.f32 -1.442695, %v1428_v31 }
 0x4a7   : > { %v2212_v34 = vmul.f32 -1.442695, %v1423_v32 }
 0x4a8   : > { %2640 = vpow2.f32 %v2213_v33  ;;  %v2335_v35 = vpop.f32.mrb[12].mxu1 }
 0x4a9   : > { %2642 = vpow2.f32 %v2212_v34  ;;  %v1438_v37 = vadd.f32 %v2335_v35, %v3854_v23  ;;  %v1432_v38 = vpop.f32.mrb[13].mxu1 }
 0x4aa   : > { %v2637_v52 = vpop.eup %2636  ;;  %v1433_v40 = vadd.f32 %v3854_v23, %v1432_v38 }
 0x4ab   : > { %v2639_v41 = vpop.eup %2638  ;;  %v2215_v42 = vmul.f32 -1.442695, %v1438_v37  ;;  %v1540_v43 = vadd.f32 1.0, %v2637_v52 }
 0x4ac   : > { %v1539_v0 = vadd.f32 1.0, %v2639_v41  ;;  %v2214_v62 = vmul.f32 -1.442695, %v1433_v40 }
 0x4ae   : > { %2644 = vrcp.f32 %v1539_v0 }
 0x4af   : > { %2646 = vpow2.f32 %v2214_v62 }
 0x4b0   : > { %v2338_v44 = vpop.f32.mrb[14].mxu1  ;;  %2648 = vpow2.f32 %v2215_v42 }
 0x4b1   : > { %v1448_v60 = vadd.f32 %v2338_v44, %v3854_v23  ;;  %v1442_v46 = vpop.f32.mrb[15].mxu1  ;;  %2650 = vrcp.f32 %v1540_v43 }
 0x4b2   : > { %v2641_v47 = vpop.eup %2640  ;;  %v1443_v49 = vadd.f32 %v3854_v23, %v1442_v46 }
 0x4b3   : > { %v2643_v51 = vpop.eup %2642  ;;  %v2217_v53 = vmul.f32 -1.442695, %v1448_v60  ;;  %v1542_v55 = vadd.f32 1.0, %v2641_v47 }
 0x4b4   : > { %v1541_v5 = vadd.f32 1.0, %v2643_v51  ;;  %v2216_v8 = vmul.f32 -1.442695, %v1443_v49 }
 0x4b6   : > { %2652 = vrcp.f32 %v1541_v5 }
 0x4b7   : > { %2654 = vpow2.f32 %v2216_v8 }
 0x4b8   : > { %v2645_v56 = vpop.eup %2644  ;;  %v2341_v57 = vpop.f32.mrb[16].mxu1  ;;  %2656 = vpow2.f32 %v2217_v53 }
 0x4b9   : > { %v1458_v59 = vadd.f32 %v2341_v57, %v3854_v23  ;;  %v1452_v61 = vpop.f32.mrb[17].mxu1  ;;  %2228 = vmatmul.mubr.msk.f32.vlgmr.msra.gmra.mrb[24].mxu1 %vm928_vm4, %v2645_v56  ;;  %v2647_v18 = vpop.eup %2646  ;;  %2658 = vrcp.f32 %v1542_v55 }
 0x4ba   : > { %v1453_v15 = vadd.f32 %v3854_v23, %v1452_v61  ;;  %1729 = vmatprep.mubr.f32.mxu1 %v3125_v22  ;;  %v2649_v1 = vpop.eup %2648  ;;  %v1543_v2 = vadd.f32 1.0, %v2647_v18 }
 0x4bb   : > { %v2651_v3 = vpop.eup %2650  ;;  %v2219_v50 = vmul.f32 -1.442695, %v1458_v59  ;;  %v1544_v6 = vadd.f32 1.0, %v2649_v1 }
 0x4bc   : > { %v2218_v4 = vmul.f32 -1.442695, %v1453_v15  ;;  %2660 = vrcp.f32 %v1543_v2 }
 0x4bd   : > { %2229 = vmatmul.mubr.msk.f32.gmra.mrb[26].mxu1 %vm928_vm4, %v2651_v3 }
 0x4be   : > { %1735 = vmatprep.mubr.f32.mxu1 %v3125_v22  ;;  %2662 = vpow2.f32 %v2218_v4 }
 0x4bf   : > { %2664 = vpow2.f32 %v2219_v50 }
 0x4c0   : > { %v2653_v29 = vpop.eup %2652  ;;  %v2344_v26 = vpop.f32.mrb[18].mxu1  ;;  %2666 = vrcp.f32 %v1544_v6 }
 0x4c1   : > { %v1468_v7 = vadd.f32 %v2344_v26, %v3854_v23  ;;  %v1462_v9 = vpop.f32.mrb[19].mxu1  ;;  %2230 = vmatmul.mubr.msk.f32.gmra.mrb[28].mxu1 %vm928_vm4, %v2653_v29  ;;  %v2655_v10 = vpop.eup %2654 }
 0x4c2   : > { %v1463_v11 = vadd.f32 %v3854_v23, %v1462_v9  ;;  %1741 = vmatprep.mubr.f32.mxu1 %v3125_v22  ;;  %v2657_v12 = vpop.eup %2656  ;;  %v1545_v13 = vadd.f32 1.0, %v2655_v10 }
 0x4c3   : > { %v2659_v14 = vpop.eup %2658  ;;  %v2221_v39 = vmul.f32 -1.442695, %v1468_v7  ;;  %v1546_v16 = vadd.f32 1.0, %v2657_v12 }
 0x4c4   : > { %v2220_v36 = vmul.f32 -1.442695, %v1463_v11  ;;  %2668 = vrcp.f32 %v1545_v13 }
 0x4c5   : > { %2231 = vmatmul.mubr.msk.f32.gmra.mrb[30].mxu1 %vm928_vm4, %v2659_v14 }
 0x4c6   : > { %1747 = vmatprep.mubr.f32.mxu1 %v3125_v22  ;;  %2670 = vpow2.f32 %v2220_v36  ;;  %v2661_v17 = vpop.eup %2660 }
 0x4c7   : > { %2672 = vpow2.f32 %v2221_v39 }
 0x4c8   : > { %v2347_v19 = vpop.f32.mrb[20].mxu1  ;;  %v2663_v20 = vpop.eup %2662  ;;  %2674 = vrcp.f32 %v1546_v16 }
 0x4c9   : > { %v1478_v21 = vadd.f32 %v2347_v19, %v3854_v23  ;;  %v1472_v48 = vpop.f32.mrb[21].mxu1  ;;  %2232 = vmatmul.mubr.msk.f32.gmra.mrb[32].mxu1 %vm928_vm4, %v2661_v17  ;;  %v1547_v45 = vadd.f32 1.0, %v2663_v20  ;;  %v2665_v63 = vpop.eup %2664 }
 0x4ca   : > { %v1473_v24 = vadd.f32 %v3854_v23, %v1472_v48  ;;  %1753 = vmatprep.mubr.f32.mxu1 %v3125_v22  ;;  %v2667_v25 = vpop.eup %2666  ;;  %v1548_v28 = vadd.f32 1.0, %v2665_v63 }
 0x4cb   : > { %2676 = vrcp.f32 %v1547_v45  ;;  %v2223_v27 = vmul.f32 -1.442695, %v1478_v21 }
 0x4cc   : > { %v2222_v58 = vmul.f32 -1.442695, %v1473_v24 }
 0x4cd   : > { %2233 = vmatmul.mubr.msk.f32.gmra.mrb[34].mxu1 %vm928_vm4, %v2667_v25 }
 0x4ce   : > { %2678 = vpow2.f32 %v2222_v58  ;;  %1759 = vmatprep.mubr.f32.mxu1 %v3125_v22  ;;  %v2669_v30 = vpop.eup %2668 }
 0x4cf   : > { %2680 = vpow2.f32 %v2223_v27 }
 0x4d0   : > { %v2350_v31 = vpop.f32.mrb[22].mxu1  ;;  %v2671_v54 = vpop.eup %2670  ;;  %2682 = vrcp.f32 %v1548_v28 }
 0x4d1   : > { %v1488_v32 = vadd.f32 %v2350_v31, %v3854_v23  ;;  %v1482_v33 = vpop.f32.mrb[23].mxu1  ;;  %2234 = vmatmul.mubr.msk.f32.gmra.mrb[36].mxu1 %vm928_vm4, %v2669_v30  ;;  %v1549_v34 = vadd.f32 1.0, %v2671_v54  ;;  %v2673_v37 = vpop.eup %2672 }
 0x4d2   : > { %v1483_v35 = vadd.f32 %v3854_v23, %v1482_v33  ;;  %1765 = vmatprep.mubr.f32.mxu1 %v3125_v22  ;;  %v2675_v38 = vpop.eup %2674  ;;  %v1550_v41 = vadd.f32 1.0, %v2673_v37 }
 0x4d3   : > { %2684 = vrcp.f32 %v1549_v34  ;;  %v2225_v40 = vmul.f32 -1.442695, %v1488_v32 }
 0x4d4   : > { %v2224_v52 = vmul.f32 -1.442695, %v1483_v35 }
 0x4d5   : > { %2235 = vmatmul.mubr.msk.f32.gmra.mrb[38].mxu1 %vm928_vm4, %v2675_v38  ;;  %v2677_v0 = vpop.eup %2676 }
 0x4d6   : > { %2686 = vpow2.f32 %v2224_v52  ;;  %1771 = vmatprep.mubr.f32.mxu1 %v3125_v22 }
 0x4d7   : > { %2688 = vpow2.f32 %v2225_v40 }
 0x4d8   : > { %v2679_v62 = vpop.eup %2678  ;;  %2690 = vrcp.f32 %v1550_v41 }
 0x4d9   : > { %2236 = vmatmul.mubr.msk.f32.gmra.mrb[40].mxu1 %vm928_vm4, %v2677_v0  ;;  %v1551_v23 = vadd.f32 1.0, %v2679_v62  ;;  %v2681_v42 = vpop.eup %2680 }
 0x4da   : > { %1777 = vmatprep.mubr.f32.mxu1 %v3125_v22  ;;  %v2683_v43 = vpop.eup %2682  ;;  %v1552_v44 = vadd.f32 1.0, %v2681_v42 }
 0x4db   : > { %2692 = vrcp.f32 %v1551_v23 }
 0x4dc   : > { %2694 = vrcp.f32 %v1552_v44 }
 0x4dd   : > { %2237 = vmatmul.mubr.msk.f32.gmra.mrb[42].mxu1 %vm928_vm4, %v2683_v43  ;;  %v2685_v60 = vpop.eup %2684 }
 0x4de   : > { %1783 = vmatprep.mubr.f32.mxu1 %v3125_v22 }
 0x4e0   : > { %v2687_v46 = vpop.eup %2686 }
 0x4e1   : > { %2238 = vmatmul.mubr.msk.f32.gmra.mrb[44].mxu1 %vm928_vm4, %v2685_v60  ;;  %v1553_v47 = vadd.f32 1.0, %v2687_v46  ;;  %v2689_v49 = vpop.eup %2688 }
 0x4e2   : > { %1789 = vmatprep.mubr.f32.mxu1 %v3125_v22  ;;  %v2691_v51 = vpop.eup %2690  ;;  %v1554_v5 = vadd.f32 1.0, %v2689_v49 }
 0x4e3   : > { %2696 = vrcp.f32 %v1553_v47 }
 0x4e4   : > { %2698 = vrcp.f32 %v1554_v5 }
 0x4e5   : > { %2239 = vmatmul.mubr.msk.f32.gmra.mrb[46].mxu1 %vm928_vm4, %v2691_v51  ;;  %v2693_v8 = vpop.eup %2692 }
 0x4e6   : > { %1795 = vmatprep.mubr.f32.mxu1 %v3125_v22  ;;  %v2695_v53 = vpop.eup %2694 }
 0x4e9   : > { %2240 = vmatmul.mubr.msk.f32.gmra.mrb[48].mxu1 %vm928_vm4, %v2693_v8 }
 0x4ea   : > { %1801 = vmatprep.mubr.f32.mxu1 %v3125_v22 }
 0x4ed   : > { %2241 = vmatmul.mubr.msk.f32.gmra.mrb[50].mxu1 %vm928_vm4, %v2695_v53  ;;  %v2697_v55 = vpop.eup %2696 }
 0x4ee   : > { %1807 = vmatprep.mubr.f32.mxu1 %v3125_v22  ;;  %v2699_v56 = vpop.eup %2698 }
 0x4f1   : > { %2242 = vmatmul.mubr.msk.f32.gmra.mrb[52].mxu1 %vm928_vm4, %v2697_v55 }
 0x4f2   : > { %1813 = vmatprep.mubr.f32.mxu1 %v3125_v22 }
 0x4f5   : > { %2243 = vmatmul.mubr.msk.f32.gmra.mrb[54].mxu1 %vm928_vm4, %v2699_v56 }
 0x4f6   : > { %2997 = shalt.err (!%p2994_p13)
}
 0x4f7   : > { %s2998_s4 = scalar_lea.hbm %s3908_s6, 2048  ;;  %s3002_s28 = scalar_lea.hbm %s4137_s12, 6144 }
 0x4f8   : > { %p2999_p1 = scmp.ne.s32.totalorder %s3908_s6, %s2998_s4  ;;  %p3003_p9 = scmp.lt.u32.totalorder %s3908_s6, %s4137_s12 }
 0x4f9   : > { %p3004_p10 = scmp.lt.u32.totalorder %s3002_s28, %s2998_s4  ;;  %p3006_p5 = scmp.lt.u32.totalorder %s2998_s4, %s3908_s6 }
 0x4fa   : > { %p3000_p3 = pnand %p2999_p1, %p4138_p6 }
 0x4fb   : > { %p3005_p4 = por %p3004_p10, %p3003_p9 }
 0x4fc   : > { %p3001_p2 = pneg %p3000_p3 }
 0x4fd   : > { %p3007_p8 = por %p3006_p5, %p3005_p4 }
 0x4ff   : > { %p3008_p7 = pnand %p3007_p8, %p3001_p2 }
 0x501   : > { %3011 = shalt.err (!%p3008_p7)
}
 0x502   : > { %s3127_s3 = smov 128   ;;  %s3128_s22 = smov 8   ;;  %v1595_v22 = vlaneseq  ;;  %v1593_v61 = vld [vmem:[#allocation17] sm:$0x3] }
 0x503   : > { %2428 = dma.vmem_to_hbm [thread:$0]  (%p4138_p6), %s3910_s1, 2048, %s3908_s6, %s1875_s14, %s3127_s3, %s3127_s3, %s3128_s22  }
 0x504   : > { %v1596_v57 = vshrl.u32 %v1595_v22, 7  ;;  %s3944_s11 = scalar_lea.vmem [#allocation19], %s2128_s16  ;;  %s2257_s16 = sshll.u32 %s3213_s23, 12 }
 0x505   : > { %s1889_s1 = sshll.u32 %s3944_s11, 4  ;;  %s4139_s25 = sld [smem:[#allocation38_spill]]  ;;  %s4027_s1 = int_to_ptr.vmem [resolvable:$true] %s1889_s1 }
 0x506   : > { %v1597_v59 = vsub.s32 0, %v1596_v57  ;;  %v1601_v18 = vsub.s32 1, %v1596_v57  ;;  %s1870_s23 = scalar_lea.sflag [#allocation4], %s3540_s2  ;;  %s3012_s0 = scalar_lea.vmem %s4027_s1, 4096 }
 0x507   : > { %p3013_p11 = scmp.ne.s32.totalorder %s4027_s1, %s3012_s0  ;;  %s3129_s4 = smov [#allocation19]  }
 0x508   : > { %v3936_v15 = vrot.slane %v1593_v61, %v1597_v59  ;;  %v3938_v1 = vrot.slane %v1593_v61, %v1601_v18  ;;  %s3016_s15 = sshll.u32 %s3129_s4, 4  ;;  %s3017_s15 = int_to_ptr.vmem [resolvable:$false] %s3016_s15 }
 0x509   : > { %p3014_p0 = pnand %p3013_p11, %p4138_p6  ;;  %s3018_s29 = scalar_lea.vmem %s3017_s15, 8192 }
 0x50a   : > { %p3019_p13 = scmp.lt.s32.totalorder %s4027_s1, %s3017_s15  ;;  %p3020_p1 = scmp.lt.s32.totalorder %s3018_s29, %s3012_s0 }
 0x50b   : > { %s4025_s30 = scalar_lea.hbm %s4139_s25, %s2257_s16  ;;  %p3015_p12 = pneg %p3014_p0 }
 0x50c   : > { %p3021_p3 = por %p3020_p1, %p3019_p13 }
 0x50e   : > { %p3022_p2 = pnand %p3021_p3, %p3015_p12 }
 0x58c   : > { %v1725_v2 = vpop.f32.mrb[24].mxu1 }
 0x58d   : > { %v1726_v3 = vadd.f32 %v1725_v2, %v3936_v15  ;;  %v1727_v4 = vpop.f32.mrb[25].mxu1 }
 0x58e   : > { %v1728_v50 = vadd.f32 %v1727_v4, %v3938_v1 }
 0x58f   : > { %1820 = vst [vmem:[%s3944_s11] sm:$0xff] %v1726_v3 }
 0x590   : > { %1821 = vst.msk [vmem:[%s3944_s11 + $0x8] sm:$0xff] %vm624_vm0, %v1728_v50  ;;  %v1731_v6 = vpop.f32.mrb[26].mxu1 }
 0x591   : > { %v1732_v29 = vadd.f32 %v1731_v6, %v3936_v15  ;;  %v1733_v26 = vpop.f32.mrb[27].mxu1 }
 0x592   : > { %v1734_v7 = vadd.f32 %v1733_v26, %v3938_v1 }
 0x593   : > { %1822 = vst [vmem:[%s3944_s11 + $0x10] sm:$0xff] %v1732_v29 }
 0x594   : > { %1823 = vst.msk [vmem:[%s3944_s11 + $0x18] sm:$0xff] %vm624_vm0, %v1734_v7  ;;  %v1737_v9 = vpop.f32.mrb[28].mxu1 }
 0x595   : > { %v1738_v10 = vadd.f32 %v1737_v9, %v3936_v15  ;;  %v1739_v11 = vpop.f32.mrb[29].mxu1 }
 0x596   : > { %v1740_v12 = vadd.f32 %v1739_v11, %v3938_v1 }
 0x597   : > { %1824 = vst [vmem:[%s3944_s11 + $0x20] sm:$0xff] %v1738_v10 }
 0x598   : > { %1825 = vst.msk [vmem:[%s3944_s11 + $0x28] sm:$0xff] %vm624_vm0, %v1740_v12  ;;  %v1743_v13 = vpop.f32.mrb[30].mxu1 }
 0x599   : > { %v1744_v14 = vadd.f32 %v1743_v13, %v3936_v15  ;;  %v1745_v36 = vpop.f32.mrb[31].mxu1 }
 0x59a   : > { %v1746_v39 = vadd.f32 %v1745_v36, %v3938_v1 }
 0x59b   : > { %1826 = vst [vmem:[%s3944_s11 + $0x30] sm:$0xff] %v1744_v14 }
 0x59c   : > { %1827 = vst.msk [vmem:[%s3944_s11 + $0x38] sm:$0xff] %vm624_vm0, %v1746_v39  ;;  %v1749_v16 = vpop.f32.mrb[32].mxu1 }
 0x59d   : > { %v1750_v17 = vadd.f32 %v1749_v16, %v3936_v15  ;;  %v1751_v19 = vpop.f32.mrb[33].mxu1 }
 0x59e   : > { %v1752_v20 = vadd.f32 %v1751_v19, %v3938_v1 }
 0x59f   : > { %1828 = vst [vmem:[%s3944_s11 + $0x40] sm:$0xff] %v1750_v17 }
 0x5a0   : > { %1829 = vst.msk [vmem:[%s3944_s11 + $0x48] sm:$0xff] %vm624_vm0, %v1752_v20  ;;  %v1755_v21 = vpop.f32.mrb[34].mxu1 }
 0x5a1   : > { %v1756_v48 = vadd.f32 %v1755_v21, %v3936_v15  ;;  %v1757_v45 = vpop.f32.mrb[35].mxu1 }
 0x5a2   : > { %v1758_v24 = vadd.f32 %v1757_v45, %v3938_v1 }
 0x5a3   : > { %1830 = vst [vmem:[%s3944_s11 + $0x50] sm:$0xff] %v1756_v48 }
 0x5a4   : > { %1831 = vst.msk [vmem:[%s3944_s11 + $0x58] sm:$0xff] %vm624_vm0, %v1758_v24  ;;  %v1761_v63 = vpop.f32.mrb[36].mxu1 }
 0x5a5   : > { %v1762_v25 = vadd.f32 %v1761_v63, %v3936_v15  ;;  %v1763_v58 = vpop.f32.mrb[37].mxu1 }
 0x5a6   : > { %v1764_v27 = vadd.f32 %v1763_v58, %v3938_v1 }
 0x5a7   : > { %1832 = vst [vmem:[%s3944_s11 + $0x60] sm:$0xff] %v1762_v25 }
 0x5a8   : > { %1833 = vst.msk [vmem:[%s3944_s11 + $0x68] sm:$0xff] %vm624_vm0, %v1764_v27  ;;  %v1767_v28 = vpop.f32.mrb[38].mxu1 }
 0x5a9   : > { %v1768_v30 = vadd.f32 %v1767_v28, %v3936_v15  ;;  %v1769_v31 = vpop.f32.mrb[39].mxu1 }
 0x5aa   : > { %v1770_v54 = vadd.f32 %v1769_v31, %v3938_v1 }
 0x5ab   : > { %1834 = vst [vmem:[%s3944_s11 + $0x70] sm:$0xff] %v1768_v30 }
 0x5ac   : > { %1835 = vst.msk [vmem:[%s3944_s11 + $0x78] sm:$0xff] %vm624_vm0, %v1770_v54  ;;  %v1773_v32 = vpop.f32.mrb[40].mxu1 }
 0x5ad   : > { %v1774_v33 = vadd.f32 %v1773_v32, %v3936_v15  ;;  %v1775_v34 = vpop.f32.mrb[41].mxu1 }
 0x5ae   : > { %v1776_v35 = vadd.f32 %v1775_v34, %v3938_v1 }
 0x5af   : > { %1836 = vst [vmem:[%s3944_s11 + $0x80] sm:$0xff] %v1774_v33 }
 0x5b0   : > { %1837 = vst.msk [vmem:[%s3944_s11 + $0x88] sm:$0xff] %vm624_vm0, %v1776_v35  ;;  %v1779_v37 = vpop.f32.mrb[42].mxu1 }
 0x5b1   : > { %v1780_v38 = vadd.f32 %v1779_v37, %v3936_v15  ;;  %v1781_v52 = vpop.f32.mrb[43].mxu1 }
 0x5b2   : > { %v1782_v40 = vadd.f32 %v1781_v52, %v3938_v1 }
 0x5b3   : > { %1838 = vst [vmem:[%s3944_s11 + $0x90] sm:$0xff] %v1780_v38 }
 0x5b4   : > { %1839 = vst.msk [vmem:[%s3944_s11 + $0x98] sm:$0xff] %vm624_vm0, %v1782_v40  ;;  %v1785_v41 = vpop.f32.mrb[44].mxu1 }
 0x5b5   : > { %v1786_v0 = vadd.f32 %v1785_v41, %v3936_v15  ;;  %v1787_v62 = vpop.f32.mrb[45].mxu1 }
 0x5b6   : > { %v1788_v23 = vadd.f32 %v1787_v62, %v3938_v1 }
 0x5b7   : > { %1840 = vst [vmem:[%s3944_s11 + $0xa0] sm:$0xff] %v1786_v0 }
 0x5b8   : > { %1841 = vst.msk [vmem:[%s3944_s11 + $0xa8] sm:$0xff] %vm624_vm0, %v1788_v23  ;;  %v1791_v42 = vpop.f32.mrb[46].mxu1 }
 0x5b9   : > { %v1792_v43 = vadd.f32 %v1791_v42, %v3936_v15  ;;  %v1793_v44 = vpop.f32.mrb[47].mxu1 }
 0x5ba   : > { %v1794_v60 = vadd.f32 %v1793_v44, %v3938_v1 }
 0x5bb   : > { %1842 = vst [vmem:[%s3944_s11 + $0xb0] sm:$0xff] %v1792_v43 }
 0x5bc   : > { %1843 = vst.msk [vmem:[%s3944_s11 + $0xb8] sm:$0xff] %vm624_vm0, %v1794_v60  ;;  %v1797_v46 = vpop.f32.mrb[48].mxu1 }
 0x5bd   : > { %v1798_v47 = vadd.f32 %v1797_v46, %v3936_v15  ;;  %v1799_v49 = vpop.f32.mrb[49].mxu1 }
 0x5be   : > { %v1800_v51 = vadd.f32 %v1799_v49, %v3938_v1 }
 0x5bf   : > { %1844 = vst [vmem:[%s3944_s11 + $0xc0] sm:$0xff] %v1798_v47 }
 0x5c0   : > { %1845 = vst.msk [vmem:[%s3944_s11 + $0xc8] sm:$0xff] %vm624_vm0, %v1800_v51  ;;  %v1803_v5 = vpop.f32.mrb[50].mxu1 }
 0x5c1   : > { %v1804_v8 = vadd.f32 %v1803_v5, %v3936_v15  ;;  %v1805_v53 = vpop.f32.mrb[51].mxu1 }
 0x5c2   : > { %v1806_v55 = vadd.f32 %v1805_v53, %v3938_v1 }
 0x5c3   : > { %1846 = vst [vmem:[%s3944_s11 + $0xd0] sm:$0xff] %v1804_v8 }
 0x5c4   : > { %1847 = vst.msk [vmem:[%s3944_s11 + $0xd8] sm:$0xff] %vm624_vm0, %v1806_v55  ;;  %v1809_v56 = vpop.f32.mrb[52].mxu1 }
 0x5c5   : > { %v1810_v22 = vadd.f32 %v1809_v56, %v3936_v15  ;;  %v1811_v57 = vpop.f32.mrb[53].mxu1 }
 0x5c6   : > { %v1812_v59 = vadd.f32 %v1811_v57, %v3938_v1 }
 0x5c7   : > { %1848 = vst [vmem:[%s3944_s11 + $0xe0] sm:$0xff] %v1810_v22 }
 0x5c8   : > { %1849 = vst.msk [vmem:[%s3944_s11 + $0xe8] sm:$0xff] %vm624_vm0, %v1812_v59  ;;  %v1815_v61 = vpop.f32.mrb[54].mxu1 }
 0x5c9   : > { %v1816_v18 = vadd.f32 %v1815_v61, %v3936_v15  ;;  %v1817_v2 = vpop.f32.mrb[55].mxu1 }
 0x5ca   : > { %v1818_v3 = vadd.f32 %v1817_v2, %v3938_v1 }
 0x5cb   : > { %1850 = vst [vmem:[%s3944_s11 + $0xf0] sm:$0xff] %v1816_v18 }
 0x5cc   : > { %1851 = vst.msk [vmem:[%s3944_s11 + $0xf8] sm:$0xff] %vm624_vm0, %v1818_v3 }
 0x5cd   : > { %3025 = shalt.err (!%p3022_p2)
}
 0x5ce   : > { %s3026_s28 = scalar_lea.hbm %s4025_s30, 4096  ;;  %s3030_s3 = scalar_lea.hbm %s4139_s25, 12288 }
 0x5cf   : > { %p3027_p9 = scmp.ne.s32.totalorder %s4025_s30, %s3026_s28  ;;  %p3031_p5 = scmp.lt.u32.totalorder %s4025_s30, %s4139_s25 }
 0x5d0   : > { %p3032_p8 = scmp.lt.u32.totalorder %s3030_s3, %s3026_s28  ;;  %p3034_p11 = scmp.lt.u32.totalorder %s3026_s28, %s4025_s30 }
 0x5d1   : > { %p3028_p10 = pnand %p3027_p9, %p4138_p6 }
 0x5d2   : > { %p3033_p7 = por %p3032_p8, %p3031_p5 }
 0x5d3   : > { %p3029_p4 = pneg %p3028_p10 }
 0x5d4   : > { %p3035_p0 = por %p3034_p11, %p3033_p7 }
 0x5d6   : > { %p3036_p12 = pnand %p3035_p0, %p3029_p4 }
 0x5d8   : > { %3039 = shalt.err (!%p3036_p12)
}
 0x5d9   : > { %s3130_s16 = smov 256   ;;  %s3131_s6 = smov 16  }
 0x5da   : > { %2427 = dma.vmem_to_hbm [thread:$0]  (%p4138_p6), %s4027_s1, 4096, %s4025_s30, %s1870_s23, %s3130_s16, %s3130_s16, %s3131_s6  }
 0x5db PF: > { %p2487_p13 = scmp.ge.s32.totalorder %s3106_s20, 2  ;;  %s1920_s14 = sand.u32 1, %s3094_s17  }
 0x5dc   : > { %p4140_p1 = scmp.ne.s32.totalorder %s4117_s10, 0  ;;  %s1921_s0 = scalar_lea.sflag [#allocation4], %s1920_s14 }
 0x5de   : > { %p2464_p3 = pnand %p2487_p13, %p4140_p1 }
 0x5e0   : > { %3085 = dma.done.wait (!%p2464_p3), %s1921_s0, 4096  }
 0x5e1   : > { %3087 = vsyncadd (!%p2464_p3), %s1921_s0, 4294963200  ;;  %s1930_s4 = scalar_lea.sflag [#allocation21], %s1920_s14 }
 0x5e2   : > { %3089 = dma.done.wait (!%p2464_p3), %s1930_s4, 2048  }
 0x5e3   : > { %3091 = vsyncadd (!%p2464_p3), %s1930_s4, 4294965248  ;;  %p35_p6 = scmp.ge.s32.totalorder %s3412_s27, 5   ;;  %s4141_s17 = smov %s3098_s18 }
 0x5e4   : > { %s4142_s18 = smov %s3102_s19  ;;  %s4143_s19 = smov %s3423_s26 }
 0x5e5   : > { %s4144_s20 = smov %s3412_s27  ;;  %37 = sbr.rel (!%p35_p6) target bundleno = 22 (0x16), region = 167 }
 0x5ec   :  { %1935 = vsyncpa [#allocation3], 1 }
 0x5ed   :  { %1937 = vsyncpa [#allocation3 + $0x1], 1 }
 0x5ee   :  { %1938 = vsyncpa [#allocation6], 1 }
 0x5ef   :  { %1939 = vsyncpa [#allocation9], 1 }
 0x5f0   :  { %1940 = vsyncpa [#allocation12], 1 }
 0x5f1   :  { %1942 = vsyncpa [#allocation12 + $0x1], 1 }
 0x5f2   :  { %1943 = vsyncpa [#allocation15], 1 }
 0x5f3   :  { %1944 = vsyncpa [#allocation18], 1 }
 0x5f4   :  { %1945 = vsyncpa [#allocation4], 1 }
 0x5f5   :  { %1947 = vsyncpa [#allocation4 + $0x1], 1 }
 0x5f6   :  { %1948 = vsyncpa [#allocation21], 1 }
 0x5f7   :  { %1950 = vsyncpa [#allocation21 + $0x1], 1 }

</bundles_post_ra>
